<compile_context>
chip_gen: v6e
topology: v6e:2x2x1
jax: 0.10.0
libtpu: 0.0.40
codegen_flags: <defaults>
</compile_context>

<pallas_src>
import jax
import jax.numpy as jnp
import numpy as np
from jax.experimental import pallas as pl
from jax.experimental.pallas import tpu as pltpu

_LANES = 128
_SUBLANES = {4: 8, 2: 16, 1: 32}


def _round_up(x, m):
    return ((x + m - 1) // m) * m


def _vmem_limit_bytes():
    """Generation-aware scoped-VMEM limit (~75% of physical), safe fallback."""
    try:
        cap = int(pltpu.get_tpu_info().vmem_capacity_bytes)
        if cap > 0:
            return int(0.75 * cap)
    except Exception:
        pass
    return 32 * 1024 * 1024


# ------------------------- fused GRU + fc head kernel ------------------------
def make_fused_gru_kernel(T, Bp, Din_p, Mp, Kp):
    """Kernel for grid=(L,) over layers.  All sizes are padded/static.

    Refs: x, w_ih, w_hh, b_i, b_hn, fc_w, fc_b, out, seq_scratch, gi_scratch.
    The (T*Bp, Mp) inter-layer sequence and (T*Bp, 3Mp) pre-activations live in
    VMEM scratch that persists across grid (=layer) iterations; only the tiny
    (Bp, Kp) logits ever go back to HBM.
    """
    three_mp = 3 * Mp

    def kernel(x_ref, w_ih_ref, w_hh_ref, b_i_ref, b_hn_ref,
               fc_w_ref, fc_b_ref, out_ref, seq_ref, gi_ref):
        layer = pl.program_id(0)
        last = pl.num_programs(0) - 1

        b_i = b_i_ref[...]                                   # (1, 3Mp) f32

        # ---- Hoisted input projection: one big MXU matmul for all T steps.
        # Layer 0 reads the padded input x; later layers read the previous
        # layer's output sequence kept in VMEM scratch (never touches HBM).
        @pl.when(layer == 0)
        def _():
            gi = jnp.dot(x_ref[...], w_ih_ref[...],
                         preferred_element_type=jnp.float32) + b_i
            gi_ref[...] = gi.astype(gi_ref.dtype)

        @pl.when(layer != 0)
        def _():
            gi = jnp.dot(seq_ref[...], w_ih_ref[0:Mp, :],
                         preferred_element_type=jnp.float32) + b_i
            gi_ref[...] = gi.astype(gi_ref.dtype)

        # ---- Serial recurrence: only h @ W_hh is on the critical path.
        w_hh = w_hh_ref[...]                                 # (Mp, 3Mp)
        # Hoisted broadcast (JAX does not CSE broadcast_in_dim inside loops).
        b_hn = jnp.broadcast_to(b_hn_ref[...], (Bp, Mp)).astype(jnp.float32)

        def step(row, h):
            gi_t = gi_ref[pl.ds(row, Bp), :].astype(jnp.float32)   # (Bp, 3Mp)
            gh = jnp.dot(h.astype(w_hh.dtype), w_hh,
                         preferred_element_type=jnp.float32)        # (Bp, 3Mp)
            # r/z share one EUP push on the combined lane-aligned slab.
            rz = jax.nn.sigmoid(gi_t[:, :2 * Mp] + gh[:, :2 * Mp])
            r = rz[:, :Mp]
            z = rz[:, Mp:]
            n = jnp.tanh(gi_t[:, 2 * Mp:] + r * (gh[:, 2 * Mp:] + b_hn))
            h_new = n + z * (h - n)                                 # == (1-z)*n + z*h
            # Lane-dense, sublane-aligned whole-vreg store of this step's output.
            seq_ref[pl.ds(row, Bp), :] = h_new.astype(seq_ref.dtype)
            return h_new

        h0 = jnp.zeros((Bp, Mp), jnp.float32)
        if T <= 16:
            # Small static T: full unroll (== fori_loop(unroll=True)); all
            # slices are static.
            h = h0
            for t in range(T):
                h = step(t * Bp, h)
        else:
            # Large T: bounded live ranges, moderate unroll, aligned dyn slices.
            h = jax.lax.fori_loop(
                0, T,
                lambda t, hh: step(pl.multiple_of(t * Bp, Bp), hh),
                h0, unroll=4)

        # ---- Fused fc(relu(h_{T-1})) head, emitted only at the last layer.
        @pl.when(layer == last)
        def _():
            hr = jnp.maximum(h, 0.0)
            out = jnp.dot(hr.astype(fc_w_ref.dtype), fc_w_ref[...],
                          preferred_element_type=jnp.float32) + fc_b_ref[...]
            out_ref[...] = out.astype(out_ref.dtype)

    return kernel


# --------------------- one-time parameter preparation ------------------------
def prepare_params(params, compute_dtype=jnp.float32):
    """Hoisted out of the forward: transpose, fold r/z biases, pad to hardware
    tiles (gate-blocked 128-lane layout), stack layers for streaming."""
    gru = params["gru"]
    L = len(gru)
    M = gru[0][1].shape[1]          # w_hh: (3M, M)
    D = gru[0][0].shape[1]          # w_ih(layer0): (3M, D)
    K = params["fc_w"].shape[0]

    Mp = _round_up(M, _LANES)
    Kp = _round_up(K, _LANES)
    Din_p = max(_round_up(D, _LANES), Mp)   # common contraction dim across layers

    w_ih_all = np.zeros((L, Din_p, 3 * Mp), np.float32)
    w_hh_all = np.zeros((L, Mp, 3 * Mp), np.float32)
    b_i_all = np.zeros((L, 1, 3 * Mp), np.float32)
    b_hn_all = np.zeros((L, 1, Mp), np.float32)

    for l, (w_ih, w_hh, b_ih, b_hh) in enumerate(gru):
        w_ih = np.asarray(w_ih, np.float32)
        w_hh = np.asarray(w_hh, np.float32)
        b_ih = np.asarray(b_ih, np.float32)
        b_hh = np.asarray(b_hh, np.float32)
        d_in = w_ih.shape[1]
        # Fold r/z biases; keep the n-gate hidden bias separate because
        # PyTorch computes n = tanh(gi_n + b_in + r * (gh_n + b_hn)).
        b_i = np.concatenate([b_ih[:2 * M] + b_hh[:2 * M], b_ih[2 * M:]])
        for g in range(3):  # each gate gets its own 128-aligned lane block
            w_ih_all[l, :d_in, g * Mp:g * Mp + M] = w_ih[g * M:(g + 1) * M, :].T
            w_hh_all[l, :M, g * Mp:g * Mp + M] = w_hh[g * M:(g + 1) * M, :].T
            b_i_all[l, 0, g * Mp:g * Mp + M] = b_i[g * M:(g + 1) * M]
        b_hn_all[l, 0, :M] = b_hh[2 * M:]

    fc_w = np.zeros((Mp, Kp), np.float32)
    fc_w[:M, :K] = np.asarray(params["fc_w"], np.float32).T
    fc_b = np.zeros((1, Kp), np.float32)
    fc_b[0, :K] = np.asarray(params["fc_b"], np.float32)

    return {
        "w_ih": jnp.asarray(w_ih_all, compute_dtype),   # (L, Din_p, 3Mp)
        "w_hh": jnp.asarray(w_hh_all, compute_dtype),   # (L, Mp,    3Mp)
        "b_i": jnp.asarray(b_i_all),                    # (L, 1, 3Mp) f32
        "b_hn": jnp.asarray(b_hn_all),                  # (L, 1, Mp)  f32
        "fc_w": jnp.asarray(fc_w, compute_dtype),       # (Mp, Kp)
        "fc_b": jnp.asarray(fc_b),                      # (1, Kp) f32
        "dims": dict(D=D, M=M, K=K, L=L, Mp=Mp, Kp=Kp, Din_p=Din_p),
        "compute_dtype": compute_dtype,
    }


# -------------------------------- full forward -------------------------------
def my_gru_forward(X, prep):
    """X: (B, T, D) batch-first, like the PyTorch module."""
    dims = prep["dims"]
    cdt = prep["compute_dtype"]
    L, Mp, Kp, Din_p = dims["L"], dims["Mp"], dims["Kp"], dims["Din_p"]
    B, T, D = X.shape

    sub = _SUBLANES.get(jnp.dtype(cdt).itemsize, 8)
    Bp = _round_up(B, sub)                    # sublane-aligned batch

    # batch-first -> time-major -> padded flat (T*Bp, Din_p); row t*Bp+b == (t,b).
    x = jnp.transpose(X, (1, 0, 2)).astype(cdt)
    x = jnp.pad(x, ((0, 0), (0, Bp - B), (0, Din_p - D)))
    x2d = x.reshape(T * Bp, Din_p)

    kernel = make_fused_gru_kernel(T, Bp, Din_p, Mp, Kp)

    out = pl.pallas_call(
        kernel,
        out_shape=jax.ShapeDtypeStruct((Bp, Kp), jnp.float32),
        grid_spec=pltpu.PrefetchScalarGridSpec(
            num_scalar_prefetch=0,
            grid=(L,),                         # stream one layer's weights at a time
            in_specs=[
                pl.BlockSpec((T * Bp, Din_p), lambda l: (0, 0)),           # x
                pl.BlockSpec((None, Din_p, 3 * Mp), lambda l: (l, 0, 0)),  # W_ih
                pl.BlockSpec((None, Mp, 3 * Mp), lambda l: (l, 0, 0)),     # W_hh
                pl.BlockSpec((None, 1, 3 * Mp), lambda l: (l, 0, 0)),      # b_i
                pl.BlockSpec((None, 1, Mp), lambda l: (l, 0, 0)),          # b_hn
                pl.BlockSpec((Mp, Kp), lambda l: (0, 0)),                  # fc_w
                pl.BlockSpec((1, Kp), lambda l: (0, 0)),                   # fc_b
            ],
            out_specs=pl.BlockSpec((Bp, Kp), lambda l: (0, 0)),
            scratch_shapes=[
                pltpu.VMEM((T * Bp, Mp), cdt),        # inter-layer sequence
                pltpu.VMEM((T * Bp, 3 * Mp), cdt),    # hoisted gate pre-activations
            ],
        ),
        compiler_params=pltpu.CompilerParams(
            dimension_semantics=("arbitrary",),       # layers are serially dependent
            vmem_limit_bytes=_vmem_limit_bytes(),
        ),
    )(x2d, prep["w_ih"], prep["w_hh"], prep["b_i"], prep["b_hn"],
      prep["fc_w"], prep["fc_b"])

    return out[:B, :dims["K"]]


# ------------------------------ pure-JAX reference ---------------------------
def ref_forward(X, params):
    B, T, _ = X.shape
    x = X.astype(jnp.float32)
    for (w_ih, w_hh, b_ih, b_hh) in params["gru"]:
        M = w_hh.shape[1]
        h = jnp.zeros((B, M), jnp.float32)
        outs = []
        for t in range(T):
            gi = x[:, t, :] @ w_ih.T + b_ih
            gh = h @ w_hh.T + b_hh
            r = jax.nn.sigmoid(gi[:, :M] + gh[:, :M])
            z = jax.nn.sigmoid(gi[:, M:2 * M] + gh[:, M:2 * M])
            n = jnp.tanh(gi[:, 2 * M:] + r * gh[:, 2 * M:])
            h = (1.0 - z) * n + z * h
            outs.append(h)
        x = jnp.stack(outs, axis=1)
    h_last = jnp.maximum(x[:, -1, :], 0.0)
    return h_last @ params["fc_w"].T + params["fc_b"]


# ---------------------------------- params -----------------------------------
def init_params(key, D, M, L, K):
    """Deterministic init matching PyTorch GRU/Linear parameter shapes."""
    scale = 1.0 / np.sqrt(M)
    params = {"gru": []}
    for l in range(L):
        d_in = D if l == 0 else M
        key, k1, k2, k3, k4 = jax.random.split(key, 5)
        params["gru"].append((
            jax.random.uniform(k1, (3 * M, d_in), jnp.float32, -scale, scale),
            jax.random.uniform(k2, (3 * M, M),    jnp.float32, -scale, scale),
            jax.random.uniform(k3, (3 * M,),      jnp.float32, -scale, scale),
            jax.random.uniform(k4, (3 * M,),      jnp.float32, -scale, scale),
        ))
    key, k5, k6 = jax.random.split(key, 3)
    params["fc_w"] = jax.random.uniform(k5, (K, M), jnp.float32, -scale, scale)
    params["fc_b"] = jax.random.uniform(k6, (K,),   jnp.float32, -scale, scale)
    return params


if __name__ == "__main__":
    # batch, seq, n_inputs, n_hidden, n_rnnlayers, n_outputs
    B, T, D, M, L, K = 2, 8, 4, 32, 2, 3

    key = jax.random.PRNGKey(0)
    key, kx = jax.random.split(key)
    X = jax.random.normal(kx, (B, T, D), jnp.float32)
    params = init_params(key, D, M, L, K)

    prep = prepare_params(params)   # one-time weight prep (hoisted out of forward)
    out = jax.block_until_ready(my_gru_forward(X, prep))
    ref = jax.block_until_ready(ref_forward(X, params))

    np.testing.assert_allclose(np.asarray(out), np.asarray(ref),
                               rtol=1e-3, atol=1e-3)
    assert out.shape == (B, K)
    print("KERNEL_OK")
</pallas_src>

<mosaic_0001>
module attributes {stable_mosaic.version = 11 : i64} {
  func.func @kernel(%arg0: i32, %arg1: memref<64x128xf32, #tpu.memory_space<vmem>>, %arg2: memref<1x128x384xf32, #tpu.memory_space<vmem>>, %arg3: memref<1x128x384xf32, #tpu.memory_space<vmem>>, %arg4: memref<1x1x384xf32, #tpu.memory_space<vmem>>, %arg5: memref<1x1x128xf32, #tpu.memory_space<vmem>>, %arg6: memref<128x128xf32, #tpu.memory_space<vmem>>, %arg7: memref<1x128xf32, #tpu.memory_space<vmem>>, %arg8: memref<8x128xf32, #tpu.memory_space<vmem>>, %arg9: memref<64x128xf32, #tpu.memory_space<vmem>>, %arg10: memref<64x384xf32, #tpu.memory_space<vmem>>) attributes {dimension_semantics = [#tpu.dimension_semantics<arbitrary>], iteration_bounds = array<i64: 2>, scalar_prefetch = 0 : i64, scratch_operands = 2 : i64, tpu.core_type = #tpu.core_type<tc>, window_params = [{pipeline_mode = #tpu.pipeline_mode<synchronous>, transform_indices = @transform_0, window_bounds = array<i64: 64, 128>}, {transform_indices = @transform_1, window_bounds = array<i64: 1, 128, 384>}, {transform_indices = @transform_2, window_bounds = array<i64: 1, 128, 384>}, {transform_indices = @transform_3, window_bounds = array<i64: 1, 1, 384>}, {transform_indices = @transform_4, window_bounds = array<i64: 1, 1, 128>}, {pipeline_mode = #tpu.pipeline_mode<synchronous>, transform_indices = @transform_5, window_bounds = array<i64: 128, 128>}, {pipeline_mode = #tpu.pipeline_mode<synchronous>, transform_indices = @transform_6, window_bounds = array<i64: 1, 128>}, {pipeline_mode = #tpu.pipeline_mode<synchronous>, transform_indices = @transform_7, window_bounds = array<i64: 8, 128>}]} {
    %c0 = arith.constant 0 : index
    %c0_0 = arith.constant 0 : index
    %c0_1 = arith.constant 0 : index
    %0 = vector.load %arg4[%c0, %c0_0, %c0_1] : memref<1x1x384xf32, #tpu.memory_space<vmem>>, vector<1x1x384xf32>
    %1 = vector.shape_cast %0 : vector<1x1x384xf32> to vector<1x384xf32>
    %c0_i32 = arith.constant 0 : i32
    %2 = arith.cmpi eq, %arg0, %c0_i32 : i32
    %3 = arith.extui %2 : i1 to i32
    %c0_i32_2 = arith.constant 0 : i32
    %4 = arith.cmpi ne, %3, %c0_i32_2 : i32
    scf.if %4 {
      %c0_53 = arith.constant 0 : index
      %c0_54 = arith.constant 0 : index
      %194 = vector.load %arg1[%c0_53, %c0_54] : memref<64x128xf32, #tpu.memory_space<vmem>>, vector<64x128xf32>
      %c0_55 = arith.constant 0 : index
      %c0_56 = arith.constant 0 : index
      %c0_57 = arith.constant 0 : index
      %195 = vector.load %arg2[%c0_55, %c0_56, %c0_57] : memref<1x128x384xf32, #tpu.memory_space<vmem>>, vector<1x128x384xf32>
      %196 = vector.shape_cast %195 : vector<1x128x384xf32> to vector<128x384xf32>
      %cst_58 = arith.constant dense<0.000000e+00> : vector<64x384xf32>
      %197 = tpu.matmul %194, %196, %cst_58 {dimension_numbers = #tpu.dot_dimension_numbers<[1], [0], [0], [1], [0, 0, 1, 1], [], []>} : vector<64x128xf32>, vector<128x384xf32>, vector<64x384xf32> -> vector<64x384xf32>
      %198 = vector.broadcast %1 : vector<1x384xf32> to vector<64x384xf32>
      %199 = arith.addf %197, %198 : vector<64x384xf32>
      %c0_59 = arith.constant 0 : index
      %c0_60 = arith.constant 0 : index
      %200 = vector.load %arg10[%c0_59, %c0_60] : memref<64x384xf32, #tpu.memory_space<vmem>>, vector<64x384xf32>
      tpu.vector_store %arg10[%c0_59, %c0_60], %199 {strides = array<i32>} : memref<64x384xf32, #tpu.memory_space<vmem>>, vector<64x384xf32>,
    } else {
    }
    %c0_i32_3 = arith.constant 0 : i32
    %5 = arith.cmpi ne, %arg0, %c0_i32_3 : i32
    %6 = arith.extui %5 : i1 to i32
    %c0_i32_4 = arith.constant 0 : i32
    %7 = arith.cmpi ne, %6, %c0_i32_4 : i32
    scf.if %7 {
      %c0_53 = arith.constant 0 : index
      %c0_54 = arith.constant 0 : index
      %194 = vector.load %arg9[%c0_53, %c0_54] : memref<64x128xf32, #tpu.memory_space<vmem>>, vector<64x128xf32>
      %c0_55 = arith.constant 0 : index
      %c0_56 = arith.constant 0 : index
      %c0_57 = arith.constant 0 : index
      %195 = vector.load %arg2[%c0_55, %c0_56, %c0_57] : memref<1x128x384xf32, #tpu.memory_space<vmem>>, vector<1x128x384xf32>
      %196 = vector.shape_cast %195 : vector<1x128x384xf32> to vector<128x384xf32>
      %cst_58 = arith.constant dense<0.000000e+00> : vector<64x384xf32>
      %197 = tpu.matmul %194, %196, %cst_58 {dimension_numbers = #tpu.dot_dimension_numbers<[1], [0], [0], [1], [0, 0, 1, 1], [], []>} : vector<64x128xf32>, vector<128x384xf32>, vector<64x384xf32> -> vector<64x384xf32>
      %198 = vector.broadcast %1 : vector<1x384xf32> to vector<64x384xf32>
      %199 = arith.addf %197, %198 : vector<64x384xf32>
      %c0_59 = arith.constant 0 : index
      %c0_60 = arith.constant 0 : index
      %200 = vector.load %arg10[%c0_59, %c0_60] : memref<64x384xf32, #tpu.memory_space<vmem>>, vector<64x384xf32>
      tpu.vector_store %arg10[%c0_59, %c0_60], %199 {strides = array<i32>} : memref<64x384xf32, #tpu.memory_space<vmem>>, vector<64x384xf32>,
    } else {
    }
    %c0_5 = arith.constant 0 : index
    %c0_6 = arith.constant 0 : index
    %c0_7 = arith.constant 0 : index
    %8 = vector.load %arg3[%c0_5, %c0_6, %c0_7] : memref<1x128x384xf32, #tpu.memory_space<vmem>>, vector<1x128x384xf32>
    %9 = vector.shape_cast %8 : vector<1x128x384xf32> to vector<128x384xf32>
    %c0_8 = arith.constant 0 : index
    %c0_9 = arith.constant 0 : index
    %c0_10 = arith.constant 0 : index
    %10 = vector.load %arg5[%c0_8, %c0_9, %c0_10] : memref<1x1x128xf32, #tpu.memory_space<vmem>>, vector<1x1x128xf32>
    %11 = vector.shape_cast %10 : vector<1x1x128xf32> to vector<1x128xf32>
    %12 = vector.shape_cast %11 : vector<1x128xf32> to vector<1x128xf32>
    %13 = vector.broadcast %12 : vector<1x128xf32> to vector<8x128xf32>
    %cst = arith.constant 0.000000e+00 : f32
    %14 = vector.broadcast %cst : f32 to vector<8x128xf32>
    %c0_11 = arith.constant 0 : index
    %c0_12 = arith.constant 0 : index
    %15 = vector.load %arg10[%c0_11, %c0_12] : memref<64x384xf32, #tpu.memory_space<vmem>>, vector<8x384xf32>
    %cst_13 = arith.constant dense<0.000000e+00> : vector<8x384xf32>
    %16 = tpu.matmul %14, %9, %cst_13 {dimension_numbers = #tpu.dot_dimension_numbers<[1], [0], [0], [1], [0, 0, 1, 1], [], []>} : vector<8x128xf32>, vector<128x384xf32>, vector<8x384xf32> -> vector<8x384xf32>
    %17 = vector.extract_strided_slice %15 {offsets = [0, 0], sizes = [8, 256], strides = [1, 1]} : vector<8x384xf32> to vector<8x256xf32>
    %18 = vector.extract_strided_slice %16 {offsets = [0, 0], sizes = [8, 256], strides = [1, 1]} : vector<8x384xf32> to vector<8x256xf32>
    %19 = arith.addf %17, %18 : vector<8x256xf32>
    %20 = arith.negf %19 : vector<8x256xf32>
    %21 = math.exp %20 : vector<8x256xf32>
    %cst_14 = arith.constant 1.000000e+00 : f32
    %22 = vector.broadcast %cst_14 : f32 to vector<8x256xf32>
    %23 = arith.addf %22, %21 : vector<8x256xf32>
    %24 = arith.divf %22, %23 : vector<8x256xf32>
    %25 = vector.extract_strided_slice %24 {offsets = [0, 0], sizes = [8, 128], strides = [1, 1]} : vector<8x256xf32> to vector<8x128xf32>
    %26 = vector.extract_strided_slice %24 {offsets = [0, 128], sizes = [8, 128], strides = [1, 1]} : vector<8x256xf32> to vector<8x128xf32>
    %27 = vector.extract_strided_slice %15 {offsets = [0, 256], sizes = [8, 128], strides = [1, 1]} : vector<8x384xf32> to vector<8x128xf32>
    %28 = vector.extract_strided_slice %16 {offsets = [0, 256], sizes = [8, 128], strides = [1, 1]} : vector<8x384xf32> to vector<8x128xf32>
    %29 = arith.addf %28, %13 : vector<8x128xf32>
    %30 = arith.mulf %25, %29 : vector<8x128xf32>
    %31 = arith.addf %27, %30 : vector<8x128xf32>
    %32 = math.tanh %31 : vector<8x128xf32>
    %33 = arith.subf %14, %32 : vector<8x128xf32>
    %34 = arith.mulf %26, %33 : vector<8x128xf32>
    %35 = arith.addf %32, %34 : vector<8x128xf32>
    %c0_15 = arith.constant 0 : index
    %c0_16 = arith.constant 0 : index
    %36 = vector.load %arg9[%c0_15, %c0_16] : memref<64x128xf32, #tpu.memory_space<vmem>>, vector<8x128xf32>
    tpu.vector_store %arg9[%c0_15, %c0_16], %35 {strides = array<i32>} : memref<64x128xf32, #tpu.memory_space<vmem>>, vector<8x128xf32>,
    %c8 = arith.constant 8 : index
    %c0_17 = arith.constant 0 : index
    %37 = vector.load %arg10[%c8, %c0_17] : memref<64x384xf32, #tpu.memory_space<vmem>>, vector<8x384xf32>
    %cst_18 = arith.constant dense<0.000000e+00> : vector<8x384xf32>
    %38 = tpu.matmul %35, %9, %cst_18 {dimension_numbers = #tpu.dot_dimension_numbers<[1], [0], [0], [1], [0, 0, 1, 1], [], []>} : vector<8x128xf32>, vector<128x384xf32>, vector<8x384xf32> -> vector<8x384xf32>
    %39 = vector.extract_strided_slice %37 {offsets = [0, 0], sizes = [8, 256], strides = [1, 1]} : vector<8x384xf32> to vector<8x256xf32>
    %40 = vector.extract_strided_slice %38 {offsets = [0, 0], sizes = [8, 256], strides = [1, 1]} : vector<8x384xf32> to vector<8x256xf32>
    %41 = arith.addf %39, %40 : vector<8x256xf32>
    %42 = arith.negf %41 : vector<8x256xf32>
    %43 = math.exp %42 : vector<8x256xf32>
    %cst_19 = arith.constant 1.000000e+00 : f32
    %44 = vector.broadcast %cst_19 : f32 to vector<8x256xf32>
    %45 = arith.addf %44, %43 : vector<8x256xf32>
    %46 = arith.divf %44, %45 : vector<8x256xf32>
    %47 = vector.extract_strided_slice %46 {offsets = [0, 0], sizes = [8, 128], strides = [1, 1]} : vector<8x256xf32> to vector<8x128xf32>
    %48 = vector.extract_strided_slice %46 {offsets = [0, 128], sizes = [8, 128], strides = [1, 1]} : vector<8x256xf32> to vector<8x128xf32>
    %49 = vector.extract_strided_slice %37 {offsets = [0, 256], sizes = [8, 128], strides = [1, 1]} : vector<8x384xf32> to vector<8x128xf32>
    %50 = vector.extract_strided_slice %38 {offsets = [0, 256], sizes = [8, 128], strides = [1, 1]} : vector<8x384xf32> to vector<8x128xf32>
    %51 = arith.addf %50, %13 : vector<8x128xf32>
    %52 = arith.mulf %47, %51 : vector<8x128xf32>
    %53 = arith.addf %49, %52 : vector<8x128xf32>
    %54 = math.tanh %53 : vector<8x128xf32>
    %55 = arith.subf %35, %54 : vector<8x128xf32>
    %56 = arith.mulf %48, %55 : vector<8x128xf32>
    %57 = arith.addf %54, %56 : vector<8x128xf32>
    %c8_20 = arith.constant 8 : index
    %c0_21 = arith.constant 0 : index
    %58 = vector.load %arg9[%c8_20, %c0_21] : memref<64x128xf32, #tpu.memory_space<vmem>>, vector<8x128xf32>
    tpu.vector_store %arg9[%c8_20, %c0_21], %57 {strides = array<i32>} : memref<64x128xf32, #tpu.memory_space<vmem>>, vector<8x128xf32>,
    %c16 = arith.constant 16 : index
    %c0_22 = arith.constant 0 : index
    %59 = vector.load %arg10[%c16, %c0_22] : memref<64x384xf32, #tpu.memory_space<vmem>>, vector<8x384xf32>
    %cst_23 = arith.constant dense<0.000000e+00> : vector<8x384xf32>
    %60 = tpu.matmul %57, %9, %cst_23 {dimension_numbers = #tpu.dot_dimension_numbers<[1], [0], [0], [1], [0, 0, 1, 1], [], []>} : vector<8x128xf32>, vector<128x384xf32>, vector<8x384xf32> -> vector<8x384xf32>
    %61 = vector.extract_strided_slice %59 {offsets = [0, 0], sizes = [8, 256], strides = [1, 1]} : vector<8x384xf32> to vector<8x256xf32>
    %62 = vector.extract_strided_slice %60 {offsets = [0, 0], sizes = [8, 256], strides = [1, 1]} : vector<8x384xf32> to vector<8x256xf32>
    %63 = arith.addf %61, %62 : vector<8x256xf32>
    %64 = arith.negf %63 : vector<8x256xf32>
    %65 = math.exp %64 : vector<8x256xf32>
    %cst_24 = arith.constant 1.000000e+00 : f32
    %66 = vector.broadcast %cst_24 : f32 to vector<8x256xf32>
    %67 = arith.addf %66, %65 : vector<8x256xf32>
    %68 = arith.divf %66, %67 : vector<8x256xf32>
    %69 = vector.extract_strided_slice %68 {offsets = [0, 0], sizes = [8, 128], strides = [1, 1]} : vector<8x256xf32> to vector<8x128xf32>
    %70 = vector.extract_strided_slice %68 {offsets = [0, 128], sizes = [8, 128], strides = [1, 1]} : vector<8x256xf32> to vector<8x128xf32>
    %71 = vector.extract_strided_slice %59 {offsets = [0, 256], sizes = [8, 128], strides = [1, 1]} : vector<8x384xf32> to vector<8x128xf32>
    %72 = vector.extract_strided_slice %60 {offsets = [0, 256], sizes = [8, 128], strides = [1, 1]} : vector<8x384xf32> to vector<8x128xf32>
    %73 = arith.addf %72, %13 : vector<8x128xf32>
    %74 = arith.mulf %69, %73 : vector<8x128xf32>
    %75 = arith.addf %71, %74 : vector<8x128xf32>
    %76 = math.tanh %75 : vector<8x128xf32>
    %77 = arith.subf %57, %76 : vector<8x128xf32>
    %78 = arith.mulf %70, %77 : vector<8x128xf32>
    %79 = arith.addf %76, %78 : vector<8x128xf32>
    %c16_25 = arith.constant 16 : index
    %c0_26 = arith.constant 0 : index
    %80 = vector.load %arg9[%c16_25, %c0_26] : memref<64x128xf32, #tpu.memory_space<vmem>>, vector<8x128xf32>
    tpu.vector_store %arg9[%c16_25, %c0_26], %79 {strides = array<i32>} : memref<64x128xf32, #tpu.memory_space<vmem>>, vector<8x128xf32>,
    %c24 = arith.constant 24 : index
    %c0_27 = arith.constant 0 : index
    %81 = vector.load %arg10[%c24, %c0_27] : memref<64x384xf32, #tpu.memory_space<vmem>>, vector<8x384xf32>
    %cst_28 = arith.constant dense<0.000000e+00> : vector<8x384xf32>
    %82 = tpu.matmul %79, %9, %cst_28 {dimension_numbers = #tpu.dot_dimension_numbers<[1], [0], [0], [1], [0, 0, 1, 1], [], []>} : vector<8x128xf32>, vector<128x384xf32>, vector<8x384xf32> -> vector<8x384xf32>
    %83 = vector.extract_strided_slice %81 {offsets = [0, 0], sizes = [8, 256], strides = [1, 1]} : vector<8x384xf32> to vector<8x256xf32>
    %84 = vector.extract_strided_slice %82 {offsets = [0, 0], sizes = [8, 256], strides = [1, 1]} : vector<8x384xf32> to vector<8x256xf32>
    %85 = arith.addf %83, %84 : vector<8x256xf32>
    %86 = arith.negf %85 : vector<8x256xf32>
    %87 = math.exp %86 : vector<8x256xf32>
    %cst_29 = arith.constant 1.000000e+00 : f32
    %88 = vector.broadcast %cst_29 : f32 to vector<8x256xf32>
    %89 = arith.addf %88, %87 : vector<8x256xf32>
    %90 = arith.divf %88, %89 : vector<8x256xf32>
    %91 = vector.extract_strided_slice %90 {offsets = [0, 0], sizes = [8, 128], strides = [1, 1]} : vector<8x256xf32> to vector<8x128xf32>
    %92 = vector.extract_strided_slice %90 {offsets = [0, 128], sizes = [8, 128], strides = [1, 1]} : vector<8x256xf32> to vector<8x128xf32>
    %93 = vector.extract_strided_slice %81 {offsets = [0, 256], sizes = [8, 128], strides = [1, 1]} : vector<8x384xf32> to vector<8x128xf32>
    %94 = vector.extract_strided_slice %82 {offsets = [0, 256], sizes = [8, 128], strides = [1, 1]} : vector<8x384xf32> to vector<8x128xf32>
    %95 = arith.addf %94, %13 : vector<8x128xf32>
    %96 = arith.mulf %91, %95 : vector<8x128xf32>
    %97 = arith.addf %93, %96 : vector<8x128xf32>
    %98 = math.tanh %97 : vector<8x128xf32>
    %99 = arith.subf %79, %98 : vector<8x128xf32>
    %100 = arith.mulf %92, %99 : vector<8x128xf32>
    %101 = arith.addf %98, %100 : vector<8x128xf32>
    %c24_30 = arith.constant 24 : index
    %c0_31 = arith.constant 0 : index
    %102 = vector.load %arg9[%c24_30, %c0_31] : memref<64x128xf32, #tpu.memory_space<vmem>>, vector<8x128xf32>
    tpu.vector_store %arg9[%c24_30, %c0_31], %101 {strides = array<i32>} : memref<64x128xf32, #tpu.memory_space<vmem>>, vector<8x128xf32>,
    %c32 = arith.constant 32 : index
    %c0_32 = arith.constant 0 : index
    %103 = vector.load %arg10[%c32, %c0_32] : memref<64x384xf32, #tpu.memory_space<vmem>>, vector<8x384xf32>
    %cst_33 = arith.constant dense<0.000000e+00> : vector<8x384xf32>
    %104 = tpu.matmul %101, %9, %cst_33 {dimension_numbers = #tpu.dot_dimension_numbers<[1], [0], [0], [1], [0, 0, 1, 1], [], []>} : vector<8x128xf32>, vector<128x384xf32>, vector<8x384xf32> -> vector<8x384xf32>
    %105 = vector.extract_strided_slice %103 {offsets = [0, 0], sizes = [8, 256], strides = [1, 1]} : vector<8x384xf32> to vector<8x256xf32>
    %106 = vector.extract_strided_slice %104 {offsets = [0, 0], sizes = [8, 256], strides = [1, 1]} : vector<8x384xf32> to vector<8x256xf32>
    %107 = arith.addf %105, %106 : vector<8x256xf32>
    %108 = arith.negf %107 : vector<8x256xf32>
    %109 = math.exp %108 : vector<8x256xf32>
    %cst_34 = arith.constant 1.000000e+00 : f32
    %110 = vector.broadcast %cst_34 : f32 to vector<8x256xf32>
    %111 = arith.addf %110, %109 : vector<8x256xf32>
    %112 = arith.divf %110, %111 : vector<8x256xf32>
    %113 = vector.extract_strided_slice %112 {offsets = [0, 0], sizes = [8, 128], strides = [1, 1]} : vector<8x256xf32> to vector<8x128xf32>
    %114 = vector.extract_strided_slice %112 {offsets = [0, 128], sizes = [8, 128], strides = [1, 1]} : vector<8x256xf32> to vector<8x128xf32>
    %115 = vector.extract_strided_slice %103 {offsets = [0, 256], sizes = [8, 128], strides = [1, 1]} : vector<8x384xf32> to vector<8x128xf32>
    %116 = vector.extract_strided_slice %104 {offsets = [0, 256], sizes = [8, 128], strides = [1, 1]} : vector<8x384xf32> to vector<8x128xf32>
    %117 = arith.addf %116, %13 : vector<8x128xf32>
    %118 = arith.mulf %113, %117 : vector<8x128xf32>
    %119 = arith.addf %115, %118 : vector<8x128xf32>
    %120 = math.tanh %119 : vector<8x128xf32>
    %121 = arith.subf %101, %120 : vector<8x128xf32>
    %122 = arith.mulf %114, %121 : vector<8x128xf32>
    %123 = arith.addf %120, %122 : vector<8x128xf32>
    %c32_35 = arith.constant 32 : index
    %c0_36 = arith.constant 0 : index
    %124 = vector.load %arg9[%c32_35, %c0_36] : memref<64x128xf32, #tpu.memory_space<vmem>>, vector<8x128xf32>
    tpu.vector_store %arg9[%c32_35, %c0_36], %123 {strides = array<i32>} : memref<64x128xf32, #tpu.memory_space<vmem>>, vector<8x128xf32>,
    %c40 = arith.constant 40 : index
    %c0_37 = arith.constant 0 : index
    %125 = vector.load %arg10[%c40, %c0_37] : memref<64x384xf32, #tpu.memory_space<vmem>>, vector<8x384xf32>
    %cst_38 = arith.constant dense<0.000000e+00> : vector<8x384xf32>
    %126 = tpu.matmul %123, %9, %cst_38 {dimension_numbers = #tpu.dot_dimension_numbers<[1], [0], [0], [1], [0, 0, 1, 1], [], []>} : vector<8x128xf32>, vector<128x384xf32>, vector<8x384xf32> -> vector<8x384xf32>
    %127 = vector.extract_strided_slice %125 {offsets = [0, 0], sizes = [8, 256], strides = [1, 1]} : vector<8x384xf32> to vector<8x256xf32>
    %128 = vector.extract_strided_slice %126 {offsets = [0, 0], sizes = [8, 256], strides = [1, 1]} : vector<8x384xf32> to vector<8x256xf32>
    %129 = arith.addf %127, %128 : vector<8x256xf32>
    %130 = arith.negf %129 : vector<8x256xf32>
    %131 = math.exp %130 : vector<8x256xf32>
    %cst_39 = arith.constant 1.000000e+00 : f32
    %132 = vector.broadcast %cst_39 : f32 to vector<8x256xf32>
    %133 = arith.addf %132, %131 : vector<8x256xf32>
    %134 = arith.divf %132, %133 : vector<8x256xf32>
    %135 = vector.extract_strided_slice %134 {offsets = [0, 0], sizes = [8, 128], strides = [1, 1]} : vector<8x256xf32> to vector<8x128xf32>
    %136 = vector.extract_strided_slice %134 {offsets = [0, 128], sizes = [8, 128], strides = [1, 1]} : vector<8x256xf32> to vector<8x128xf32>
    %137 = vector.extract_strided_slice %125 {offsets = [0, 256], sizes = [8, 128], strides = [1, 1]} : vector<8x384xf32> to vector<8x128xf32>
    %138 = vector.extract_strided_slice %126 {offsets = [0, 256], sizes = [8, 128], strides = [1, 1]} : vector<8x384xf32> to vector<8x128xf32>
    %139 = arith.addf %138, %13 : vector<8x128xf32>
    %140 = arith.mulf %135, %139 : vector<8x128xf32>
    %141 = arith.addf %137, %140 : vector<8x128xf32>
    %142 = math.tanh %141 : vector<8x128xf32>
    %143 = arith.subf %123, %142 : vector<8x128xf32>
    %144 = arith.mulf %136, %143 : vector<8x128xf32>
    %145 = arith.addf %142, %144 : vector<8x128xf32>
    %c40_40 = arith.constant 40 : index
    %c0_41 = arith.constant 0 : index
    %146 = vector.load %arg9[%c40_40, %c0_41] : memref<64x128xf32, #tpu.memory_space<vmem>>, vector<8x128xf32>
    tpu.vector_store %arg9[%c40_40, %c0_41], %145 {strides = array<i32>} : memref<64x128xf32, #tpu.memory_space<vmem>>, vector<8x128xf32>,
    %c48 = arith.constant 48 : index
    %c0_42 = arith.constant 0 : index
    %147 = vector.load %arg10[%c48, %c0_42] : memref<64x384xf32, #tpu.memory_space<vmem>>, vector<8x384xf32>
    %cst_43 = arith.constant dense<0.000000e+00> : vector<8x384xf32>
    %148 = tpu.matmul %145, %9, %cst_43 {dimension_numbers = #tpu.dot_dimension_numbers<[1], [0], [0], [1], [0, 0, 1, 1], [], []>} : vector<8x128xf32>, vector<128x384xf32>, vector<8x384xf32> -> vector<8x384xf32>
    %149 = vector.extract_strided_slice %147 {offsets = [0, 0], sizes = [8, 256], strides = [1, 1]} : vector<8x384xf32> to vector<8x256xf32>
    %150 = vector.extract_strided_slice %148 {offsets = [0, 0], sizes = [8, 256], strides = [1, 1]} : vector<8x384xf32> to vector<8x256xf32>
    %151 = arith.addf %149, %150 : vector<8x256xf32>
    %152 = arith.negf %151 : vector<8x256xf32>
    %153 = math.exp %152 : vector<8x256xf32>
    %cst_44 = arith.constant 1.000000e+00 : f32
    %154 = vector.broadcast %cst_44 : f32 to vector<8x256xf32>
    %155 = arith.addf %154, %153 : vector<8x256xf32>
    %156 = arith.divf %154, %155 : vector<8x256xf32>
    %157 = vector.extract_strided_slice %156 {offsets = [0, 0], sizes = [8, 128], strides = [1, 1]} : vector<8x256xf32> to vector<8x128xf32>
    %158 = vector.extract_strided_slice %156 {offsets = [0, 128], sizes = [8, 128], strides = [1, 1]} : vector<8x256xf32> to vector<8x128xf32>
    %159 = vector.extract_strided_slice %147 {offsets = [0, 256], sizes = [8, 128], strides = [1, 1]} : vector<8x384xf32> to vector<8x128xf32>
    %160 = vector.extract_strided_slice %148 {offsets = [0, 256], sizes = [8, 128], strides = [1, 1]} : vector<8x384xf32> to vector<8x128xf32>
    %161 = arith.addf %160, %13 : vector<8x128xf32>
    %162 = arith.mulf %157, %161 : vector<8x128xf32>
    %163 = arith.addf %159, %162 : vector<8x128xf32>
    %164 = math.tanh %163 : vector<8x128xf32>
    %165 = arith.subf %145, %164 : vector<8x128xf32>
    %166 = arith.mulf %158, %165 : vector<8x128xf32>
    %167 = arith.addf %164, %166 : vector<8x128xf32>
    %c48_45 = arith.constant 48 : index
    %c0_46 = arith.constant 0 : index
    %168 = vector.load %arg9[%c48_45, %c0_46] : memref<64x128xf32, #tpu.memory_space<vmem>>, vector<8x128xf32>
    tpu.vector_store %arg9[%c48_45, %c0_46], %167 {strides = array<i32>} : memref<64x128xf32, #tpu.memory_space<vmem>>, vector<8x128xf32>,
    %c56 = arith.constant 56 : index
    %c0_47 = arith.constant 0 : index
    %169 = vector.load %arg10[%c56, %c0_47] : memref<64x384xf32, #tpu.memory_space<vmem>>, vector<8x384xf32>
    %cst_48 = arith.constant dense<0.000000e+00> : vector<8x384xf32>
    %170 = tpu.matmul %167, %9, %cst_48 {dimension_numbers = #tpu.dot_dimension_numbers<[1], [0], [0], [1], [0, 0, 1, 1], [], []>} : vector<8x128xf32>, vector<128x384xf32>, vector<8x384xf32> -> vector<8x384xf32>
    %171 = vector.extract_strided_slice %169 {offsets = [0, 0], sizes = [8, 256], strides = [1, 1]} : vector<8x384xf32> to vector<8x256xf32>
    %172 = vector.extract_strided_slice %170 {offsets = [0, 0], sizes = [8, 256], strides = [1, 1]} : vector<8x384xf32> to vector<8x256xf32>
    %173 = arith.addf %171, %172 : vector<8x256xf32>
    %174 = arith.negf %173 : vector<8x256xf32>
    %175 = math.exp %174 : vector<8x256xf32>
    %cst_49 = arith.constant 1.000000e+00 : f32
    %176 = vector.broadcast %cst_49 : f32 to vector<8x256xf32>
    %177 = arith.addf %176, %175 : vector<8x256xf32>
    %178 = arith.divf %176, %177 : vector<8x256xf32>
    %179 = vector.extract_strided_slice %178 {offsets = [0, 0], sizes = [8, 128], strides = [1, 1]} : vector<8x256xf32> to vector<8x128xf32>
    %180 = vector.extract_strided_slice %178 {offsets = [0, 128], sizes = [8, 128], strides = [1, 1]} : vector<8x256xf32> to vector<8x128xf32>
    %181 = vector.extract_strided_slice %169 {offsets = [0, 256], sizes = [8, 128], strides = [1, 1]} : vector<8x384xf32> to vector<8x128xf32>
    %182 = vector.extract_strided_slice %170 {offsets = [0, 256], sizes = [8, 128], strides = [1, 1]} : vector<8x384xf32> to vector<8x128xf32>
    %183 = arith.addf %182, %13 : vector<8x128xf32>
    %184 = arith.mulf %179, %183 : vector<8x128xf32>
    %185 = arith.addf %181, %184 : vector<8x128xf32>
    %186 = math.tanh %185 : vector<8x128xf32>
    %187 = arith.subf %167, %186 : vector<8x128xf32>
    %188 = arith.mulf %180, %187 : vector<8x128xf32>
    %189 = arith.addf %186, %188 : vector<8x128xf32>
    %c56_50 = arith.constant 56 : index
    %c0_51 = arith.constant 0 : index
    %190 = vector.load %arg9[%c56_50, %c0_51] : memref<64x128xf32, #tpu.memory_space<vmem>>, vector<8x128xf32>
    tpu.vector_store %arg9[%c56_50, %c0_51], %189 {strides = array<i32>} : memref<64x128xf32, #tpu.memory_space<vmem>>, vector<8x128xf32>,
    %c1_i32 = arith.constant 1 : i32
    %191 = arith.cmpi eq, %arg0, %c1_i32 : i32
    %192 = arith.extui %191 : i1 to i32
    %c0_i32_52 = arith.constant 0 : i32
    %193 = arith.cmpi ne, %192, %c0_i32_52 : i32
    scf.if %193 {
      %cst_53 = arith.constant 0.000000e+00 : f32
      %194 = vector.broadcast %cst_53 : f32 to vector<8x128xf32>
      %195 = arith.maximumf %189, %194 : vector<8x128xf32>
      %c0_54 = arith.constant 0 : index
      %c0_55 = arith.constant 0 : index
      %196 = vector.load %arg6[%c0_54, %c0_55] : memref<128x128xf32, #tpu.memory_space<vmem>>, vector<128x128xf32>
      %cst_56 = arith.constant dense<0.000000e+00> : vector<8x128xf32>
      %197 = tpu.matmul %195, %196, %cst_56 {dimension_numbers = #tpu.dot_dimension_numbers<[1], [0], [0], [1], [0, 0, 1, 1], [], []>} : vector<8x128xf32>, vector<128x128xf32>, vector<8x128xf32> -> vector<8x128xf32>
      %c0_57 = arith.constant 0 : index
      %c0_58 = arith.constant 0 : index
      %198 = vector.load %arg7[%c0_57, %c0_58] : memref<1x128xf32, #tpu.memory_space<vmem>>, vector<1x128xf32>
      %199 = vector.broadcast %198 : vector<1x128xf32> to vector<8x128xf32>
      %200 = arith.addf %197, %199 : vector<8x128xf32>
      %c0_59 = arith.constant 0 : index
      %c0_60 = arith.constant 0 : index
      %201 = vector.load %arg8[%c0_59, %c0_60] : memref<8x128xf32, #tpu.memory_space<vmem>>, vector<8x128xf32>
      tpu.vector_store %arg8[%c0_59, %c0_60], %200 {strides = array<i32>} : memref<8x128xf32, #tpu.memory_space<vmem>>, vector<8x128xf32>,
    } else {
    }
    return
  }
  func.func @transform_0(%arg0: i32) -> (i32, i32) {
    %c0_i32 = arith.constant 0 : i32
    %c0_i32_0 = arith.constant 0 : i32
    %c0_i32_1 = arith.constant 0 : i32
    return %c0_i32, %c0_i32_0 : i32, i32
  }
  func.func @transform_1(%arg0: i32) -> (i32, i32, i32) {
    %c0_i32 = arith.constant 0 : i32
    %c0_i32_0 = arith.constant 0 : i32
    %c0_i32_1 = arith.constant 0 : i32
    return %arg0, %c0_i32, %c0_i32_0 : i32, i32, i32
  }
  func.func @transform_2(%arg0: i32) -> (i32, i32, i32) {
    %c0_i32 = arith.constant 0 : i32
    %c0_i32_0 = arith.constant 0 : i32
    %c0_i32_1 = arith.constant 0 : i32
    return %arg0, %c0_i32, %c0_i32_0 : i32, i32, i32
  }
  func.func @transform_3(%arg0: i32) -> (i32, i32, i32) {
    %c0_i32 = arith.constant 0 : i32
    %c0_i32_0 = arith.constant 0 : i32
    %c0_i32_1 = arith.constant 0 : i32
    return %arg0, %c0_i32, %c0_i32_0 : i32, i32, i32
  }
  func.func @transform_4(%arg0: i32) -> (i32, i32, i32) {
    %c0_i32 = arith.constant 0 : i32
    %c0_i32_0 = arith.constant 0 : i32
    %c0_i32_1 = arith.constant 0 : i32
    return %arg0, %c0_i32, %c0_i32_0 : i32, i32, i32
  }
  func.func @transform_5(%arg0: i32) -> (i32, i32) {
    %c0_i32 = arith.constant 0 : i32
    %c0_i32_0 = arith.constant 0 : i32
    %c0_i32_1 = arith.constant 0 : i32
    return %c0_i32, %c0_i32_0 : i32, i32
  }
  func.func @transform_6(%arg0: i32) -> (i32, i32) {
    %c0_i32 = arith.constant 0 : i32
    %c0_i32_0 = arith.constant 0 : i32
    %c0_i32_1 = arith.constant 0 : i32
    return %c0_i32, %c0_i32_0 : i32, i32
  }
  func.func @transform_7(%arg0: i32) -> (i32, i32) {
    %c0_i32 = arith.constant 0 : i32
    %c0_i32_0 = arith.constant 0 : i32
    %c0_i32_1 = arith.constant 0 : i32
    return %c0_i32, %c0_i32_0 : i32, i32
  }
}

</mosaic_0001>

<bundles_post_ra>
// kernel: tpu_custom_call.1
= control target key start
LH: loop header
LB: loop body
LE: loop exit
PB: predicated region body
PF: predicated region fallthrough
CT: control target
= control target key end

     0   :  { %s5078_s0 = inlined_call_operand.hbm [shape: f32[64,128], index: 0, kind: input, shape index: {}]   ;;  %s5079_s1 = inlined_call_operand.hbm [shape: f32[2,128,384], index: 1, kind: input, shape index: {}]   ;;  %s5080_s2 = inlined_call_operand.hbm [shape: f32[2,128,384], index: 2, kind: input, shape index: {}]   ;;  %s5081_s3 = inlined_call_operand.hbm [shape: f32[2,1,384], index: 3, kind: input, shape index: {}]   ;;  %s5082_s4 = inlined_call_operand.vmem [shape: f32[2,1,128], index: 4, kind: input, shape index: {}]   ;;  %s5083_s5 = inlined_call_operand.hbm [shape: f32[128,128], index: 5, kind: input, shape index: {}]   ;;  %s5084_s6 = inlined_call_operand.vmem [shape: f32[1,128], index: 6, kind: input, shape index: {}]   ;;  %s5085_s7 = inlined_call_operand.hbm [shape: f32[8,128], index: 7, kind: output, shape index: {}]  }
   0x1   :  { %5116 = sst [smem:[#allocation26_spill]] %s5079_s1 }
   0x2   :  { %5117 = sst [smem:[#allocation27_spill]] %s5083_s5 }
   0x3   :  { %12 = vsyncpa [#allocation5], 0 }
   0x4   :  { %13 = vsyncpa [#allocation8], 0 }
   0x5   :  { %15 = vsyncpa [#allocation8 + $0x1], 0 }
   0x6   :  { %16 = vsyncpa [#allocation11], 0 }
   0x7   :  { %18 = vsyncpa [#allocation11 + $0x1], 0 }
   0x8   :  { %19 = vsyncpa [#allocation6], 0  ;;  %s3784_s24 = smov 0   ;;  %s3786_s25 = smov 0  }
   0x9   :  { %s3788_s26 = smov 0   ;;  %s3790_s27 = smov 0  }
   0xa LB: > { %s3803_s28 = sadd.s32 4294967295, %s3726_s27   ;;  %s3806_s29 = sadd.s32 1, %s3726_s27   ;;  %s3726_s27 = sphi %s3790_s27, %s5177_s27   ;;  %s3722_s26 = sphi %s3788_s26, %s5176_s26   ;;  %s3718_s25 = sphi %s3786_s25, %s5175_s25   ;;  %s3714_s24 = sphi %s3784_s24, %s5174_s24  }
   0xb   : > { %s50_s30 = ssub.s32 %s3726_s27, %s3806_s29  ;;  %s53_s8 = sadd.s32 1, %s3722_s26 }
   0xc   : > { %p51_p0 = scmp.eq.s32.totalorder %s50_s30, 0  ;;  %p60_p1 = scmp.ne.s32.totalorder %s3722_s26, %s3718_s25 }
   0xd   : > { %p61_p2 = scmp.eq.s32.totalorder %s3726_s27, 0  ;;  %p66_p3 = scmp.ne.s32.totalorder %s3718_s25, %s3714_s24 }
   0xe   : > { %s3816_s9 = scalar_select %p51_p0, %s3722_s26, %s53_s8  }
   0xf   : > { %p3818_p4 = por %p61_p2, %p60_p1  ;;  %p5090_p5 = scmp.eq.s32.totalorder %s3803_s28, 0 }
  0x10   : > { %5118 = sst [smem:[#allocation19_spill]] %s3816_s9  ;;  %p2653_p6 = scmp.ge.s32.totalorder %s3726_s27, 1 }
  0x11   : > { %p218_p7 = scmp.lt.s32.totalorder %s3726_s27, 3  ;;  %p3827_p8 = por %p5090_p5, %p66_p3 }
  0x12   : > { %s3728_s13 = smov [#allocation12]   ;;  %p3337_p13 = scmp.lt.s32.totalorder %s3726_s27, 2 }
  0x13   : > { %s5120_s11 = scalar_select %p3827_p8, 1, 0 }
  0x14   : > { %p3832_p10 = pnand %p2653_p6, %p218_p7  ;;  %s243_s14 = sshll.u32 %s3728_s13, 4  ;;  %s244_s14 = int_to_ptr.vmem [resolvable:$true] %s243_s14 }
  0x15   : > { %s5089_s16 = sand.u32 1, %s3726_s27   ;;  %s5086_s17 = sand.u32 1, %s3722_s26  }
  0x16   : > { %s5121_s12 = scalar_select %p3832_p10, 1, 0 }
  0x17   : > { %p3318_p11 = pneg %p3832_p10  ;;  %s3527_s18 = scalar_lea.vmem %s244_s14, 2048 }
  0x18   : > { %p3528_p1 = scmp.ne.s32.totalorder %s244_s14, %s3527_s18  ;;  %p3535_p6 = scmp.lt.s32.totalorder %s244_s14, %s244_s14 }
  0x19   : > { %p3840_p12 = pnand %p3318_p11, %p5090_p5  ;;  %p3536_p7 = scmp.lt.s32.totalorder %s3527_s18, %s3527_s18 }
  0x1b   : > { %s5122_s15 = scalar_select %p3840_p12, 1, 0 }
  0x1c   : > { %p5092_p0 = pneg %p3840_p12  ;;  %p3537_p9 = por %p3536_p7, %p3535_p6 }
  0x1e   : > { %p3530_p2 = pnand %p3528_p1, %p5092_p0 }
  0x20   : > { %p3531_p3 = pneg %p3530_p2 }
  0x22   : > { %p3538_p11 = pnand %p3537_p9, %p3531_p3 }
  0x24   : > { %3541 = shalt.err (!%p3538_p11)
}
  0x25   : > { %s5087_s19 = smov 128   ;;  %s5088_s20 = smov 8  }
  0x26   : > { %s5123_s5 = sld [smem:[#allocation27_spill]]  ;;  %s3862_s23 = smul.u32 384, %s5086_s17 }
  0x27   : > { %p3868_p9 = pnand %p3337_p13, %p3818_p4  ;;  %s5091_s30 = smul.u32 6144, %s3726_s27 }
  0x28   : > { %s5125_s1 = sld [smem:[#allocation26_spill]]  ;;  %s3885_s10 = scalar_lea.sflag [#allocation8], %s5089_s16 }
  0x29   : > { %p3891_p13 = pneg %p3868_p9 }
  0x2c   : > { %3324 = dma.hbm_to_vmem [thread:$0]  (!%p3840_p12), %s5123_s5, 2048, %s244_s14, [#allocation11], %s5087_s19, %s5087_s19, %s5088_s20  }
  0x2d   : > { %s264_s14 = scalar_lea.vmem [#allocation7], %s3862_s23 }
  0x2e   : > { %s3878_s18 = scalar_lea.hbm %s5125_s1, %s5091_s30  ;;  %s271_s21 = sshll.u32 %s264_s14, 4  ;;  %s3881_s21 = int_to_ptr.vmem [resolvable:$true] %s271_s21 }
  0x2f   : > { %s3542_s22 = scalar_lea.hbm %s3878_s18, 6144  ;;  %s3547_s14 = scalar_lea.hbm %s5125_s1, 12288 }
  0x30   : > { %p3543_p4 = scmp.ne.s32.totalorder %s3878_s18, %s3542_s22  ;;  %p3548_p3 = scmp.lt.s32.totalorder %s3878_s18, %s5125_s1 }
  0x31   : > { %p3549_p6 = scmp.lt.s32.totalorder %s3547_s14, %s3542_s22 }
  0x32   : > { %p3545_p1 = pnand %p3891_p13, %p3543_p4 }
  0x33   : > { %p3550_p7 = por %p3549_p6, %p3548_p3 }
  0x34   : > { %p3546_p2 = pneg %p3545_p1 }
  0x36   : > { %p3551_p11 = pnand %p3550_p7, %p3546_p2 }
  0x38   : > { %3554 = shalt.err (!%p3551_p11)
}
  0x39   : > { %s3555_s16 = scalar_lea.vmem %s3881_s21, 6144  ;;  %s3731_s30 = smov [#allocation7]  }
  0x3a   : > { %p3556_p5 = scmp.ne.s32.totalorder %s3881_s21, %s3555_s16  ;;  %s3560_s8 = sshll.u32 %s3731_s30, 4  ;;  %s3561_s8 = int_to_ptr.vmem [resolvable:$false] %s3560_s8 }
  0x3b   : > { %s3562_s13 = scalar_lea.vmem %s3561_s8, 12288  ;;  %p3563_p0 = scmp.lt.s32.totalorder %s3881_s21, %s3561_s8 }
  0x3c   : > { %p3558_p4 = pnand %p3556_p5, %p3891_p13  ;;  %p3564_p8 = scmp.lt.s32.totalorder %s3562_s13, %s3555_s16 }
  0x3e   : > { %p3559_p1 = pneg %p3558_p4  ;;  %p3565_p10 = por %p3564_p8, %p3563_p0 }
  0x40   : > { %p3566_p12 = pnand %p3565_p10, %p3559_p1 }
  0x42   : > { %3569 = shalt.err (!%p3566_p12)
}
  0x43   : > { %s3732_s19 = smov 384   ;;  %s3733_s20 = smov 24  }
  0x44   : > { %3328 = dma.hbm_to_vmem [thread:$0]  (!%p3868_p9), %s3878_s18, 6144, %s3881_s21, %s3885_s10, %s3732_s19, %s3732_s19, %s3733_s20  }
  0x45   : > { %s3734_s30 = smov [#allocation4]   ;;  %s5127_s16 = smul.u32 6144, %s3726_s27 }
  0x46   : > { %s230_s22 = sshll.u32 %s3734_s30, 4  ;;  %s285_s1 = scalar_lea.vmem [#allocation9], %s3862_s23  ;;  %s231_s22 = int_to_ptr.vmem [resolvable:$true] %s230_s22 }
  0x47   : > { %s3922_s13 = scalar_lea.hbm %s5080_s2, %s5127_s16  ;;  %s292_s5 = sshll.u32 %s285_s1, 4  ;;  %s293_s5 = int_to_ptr.vmem [resolvable:$true] %s292_s5 }
  0x48   : > { %s3581_s9 = scalar_lea.vmem %s231_s22, 1024  ;;  %p5128_p8 = scmp.ne.s32.totalorder %s5122_s15, 0 }
  0x49   : > { %p3582_p5 = scmp.ne.s32.totalorder %s231_s22, %s3581_s9  ;;  %p3589_p2 = scmp.lt.s32.totalorder %s231_s22, %s231_s22 }
  0x4a   : > { %p5129_p10 = pneg %p5128_p8  ;;  %p3590_p3 = scmp.lt.s32.totalorder %s3581_s9, %s3581_s9 }
  0x4c   : > { %p3584_p12 = pnand %p3582_p5, %p5129_p10  ;;  %p3591_p6 = por %p3590_p3, %p3589_p2 }
  0x4e   : > { %p3585_p0 = pneg %p3584_p12 }
  0x50   : > { %p3592_p7 = pnand %p3591_p6, %p3585_p0 }
  0x52   : > { %3595 = shalt.err (!%p3592_p7)
}
  0x53   : > { %s5130_s18 = smov 8   ;;  %s5131_s21 = smov 128  }
  0x54   : > { %3321 = dma.hbm_to_vmem [thread:$0]  (!%p5128_p8), %s5078_s0, 1024, %s231_s22, [#allocation5], %s5131_s21, %s5131_s21, %s5130_s18  }
  0x55   : > { %s3596_s1 = scalar_lea.hbm %s3922_s13, 6144  ;;  %s3601_s15 = scalar_lea.hbm %s5080_s2, 12288 }
  0x56   : > { %p3597_p11 = scmp.ne.s32.totalorder %s3922_s13, %s3596_s1  ;;  %p3602_p5 = scmp.lt.s32.totalorder %s3922_s13, %s5080_s2 }
  0x57   : > { %p3603_p10 = scmp.lt.s32.totalorder %s3601_s15, %s3596_s1 }
  0x58   : > { %p3599_p4 = pnand %p3597_p11, %p3891_p13 }
  0x59   : > { %p3604_p12 = por %p3603_p10, %p3602_p5 }
  0x5a   : > { %p3600_p1 = pneg %p3599_p4 }
  0x5c   : > { %p3605_p0 = pnand %p3604_p12, %p3600_p1 }
  0x5e   : > { %3608 = shalt.err (!%p3605_p0)
}
  0x5f   : > { %s3609_s30 = scalar_lea.vmem %s293_s5, 6144  ;;  %s3735_s22 = smov [#allocation9]  }
  0x60   : > { %p3610_p8 = scmp.ne.s32.totalorder %s293_s5, %s3609_s30  ;;  %s3614_s18 = sshll.u32 %s3735_s22, 4  ;;  %s3615_s18 = int_to_ptr.vmem [resolvable:$false] %s3614_s18 }
  0x61   : > { %s3616_s21 = scalar_lea.vmem %s3615_s18, 12288  ;;  %p3617_p6 = scmp.lt.s32.totalorder %s293_s5, %s3615_s18 }
  0x62   : > { %p3612_p2 = pnand %p3610_p8, %p3891_p13  ;;  %p3618_p7 = scmp.lt.s32.totalorder %s3616_s21, %s3609_s30 }
  0x64   : > { %p3613_p3 = pneg %p3612_p2  ;;  %p3619_p11 = por %p3618_p7, %p3617_p6 }
  0x66   : > { %p3620_p4 = pnand %p3619_p11, %p3613_p3 }
  0x68   : > { %3623 = shalt.err (!%p3620_p4)
}
  0x69   : > { %3331 = dma.hbm_to_vmem [thread:$0]  (!%p3868_p9), %s3922_s13, 6144, %s293_s5, %s3885_s10, %s3732_s19, %s3732_s19, %s3733_s20  }
  0x6a   : > { %s5132_s16 = sand.u32 1, %s3722_s26   ;;  %s3297_s9 = smul.u32 48, %s3726_s27 }
  0x6b   : > { %s3296_s1 = smul.u32 3, %s5132_s16  ;;  %s5133_s22 = sand.u32 1, %s3726_s27  }
  0x6c   : > { %s3962_s14 = scalar_lea.hbm %s5081_s3, %s3297_s9  ;;  %s303_s18 = scalar_lea.sflag [#allocation11], %s5133_s22 }
  0x6d   : > { %s306_s8 = scalar_lea.vmem [#allocation10], %s3296_s1  ;;  %s3624_s21 = scalar_lea.hbm %s3962_s14, 48 }
  0x6e   : > { %s314_s30 = sshll.u32 %s306_s8, 4  ;;  %p3625_p1 = scmp.ne.s32.totalorder %s3962_s14, %s3624_s21  ;;  %s315_s30 = int_to_ptr.vmem [resolvable:$true] %s314_s30 }
  0x6f   : > { %s3629_s19 = scalar_lea.hbm %s5081_s3, 96  ;;  %p3630_p12 = scmp.lt.s32.totalorder %s3962_s14, %s5081_s3 }
  0x70   : > { %p3627_p5 = pnand %p3625_p1, %p3891_p13  ;;  %p3631_p0 = scmp.lt.s32.totalorder %s3629_s19, %s3624_s21 }
  0x72   : > { %p3628_p10 = pneg %p3627_p5  ;;  %p3632_p8 = por %p3631_p0, %p3630_p12 }
  0x74   : > { %p3633_p2 = pnand %p3632_p8, %p3628_p10 }
  0x76   : > { %3636 = shalt.err (!%p3633_p2)
}
  0x77   : > { %s3637_s16 = scalar_lea.vmem %s315_s30, 48  ;;  %s3736_s27 = smov [#allocation10]  }
  0x78   : > { %p3638_p3 = scmp.ne.s32.totalorder %s315_s30, %s3637_s16  ;;  %s3642_s1 = sshll.u32 %s3736_s27, 4  ;;  %s3643_s1 = int_to_ptr.vmem [resolvable:$false] %s3642_s1 }
  0x79   : > { %s3644_s9 = scalar_lea.vmem %s3643_s1, 96  ;;  %p3645_p11 = scmp.lt.s32.totalorder %s315_s30, %s3643_s1 }
  0x7a   : > { %p3640_p6 = pnand %p3638_p3, %p3891_p13  ;;  %p3646_p4 = scmp.lt.s32.totalorder %s3644_s9, %s3637_s16 }
  0x7c   : > { %p3641_p7 = pneg %p3640_p6  ;;  %p3647_p1 = por %p3646_p4, %p3645_p11 }
  0x7e   : > { %p3648_p5 = pnand %p3647_p1, %p3641_p7 }
  0x80   : > { %3651 = shalt.err (!%p3648_p5)
}
  0x81   : > { %3334 = dma.hbm_to_vmem [thread:$0]  (!%p3868_p9), %s3962_s14, 48, %s315_s30, %s303_s18  }
  0x82   : > { %p5134_p10 = scmp.ne.s32.totalorder %s5121_s12, 0 }
  0x84   : > { %329 = sbr.rel (%p5134_p10) target bundleno = 2971 (0xb9b), region = 48 }
  0x89   : > { %p5135_p12 = scmp.eq.s32.totalorder %s3803_s28, 0 }
  0x8b   : > { %3693 = dma.done.wait (%p5135_p12), [#allocation5], 1024   ;;  %p5136_p13 = pmov %p5135_p12 }
  0x8c   : > { %s335_s17 = sand.u32 1, %s3803_s28   ;;  %s337_s23 = sand.u32 1, %s3718_s25  }
  0x8d   : > { %3695 = vsyncadd (%p5136_p13), [#allocation5], 4294966272  ;;  %s3298_s15 = smul.u32 384, %s337_s23  ;;  %s336_s8 = scalar_lea.sflag [#allocation8], %s335_s17 }
  0x8e   : > { %p5137_p0 = scmp.ne.s32.totalorder %s5120_s11, 0 }
  0x8f   : > { %s3990_s22 = scalar_lea.vmem [#allocation7], %s3298_s15 }
  0x90   : > { %3697 = dma.done.wait (%p5137_p0), %s336_s8, 12288  }
  0x91   : > { %3699 = vsyncadd (%p5137_p0), %s336_s8, 4294955008  ;;  %s3299_s12 = smul.u32 3, %s337_s23  ;;  %s3996_s24 = scalar_lea.vmem [#allocation9], %s3298_s15 }
  0x92   : > { %s354_s14 = scalar_lea.sflag [#allocation11], %s335_s17 }
  0x93   : > { %s357_s30 = scalar_lea.vmem [#allocation10], %s3299_s12 }
  0x94   : > { %3701 = dma.done.wait (%p5137_p0), %s354_s14, 48  }
  0x95   : > { %3703 = vsyncadd (%p5137_p0), %s354_s14, 4294967248  ;;  %p5138_p9 = pmov %p5135_p12 }
  0x97   : > { %3705 = dma.done.wait (%p5138_p9), [#allocation11], 2048   ;;  %p5139_p8 = pmov %p5138_p9 }
  0x98   : > { %p400_p2 = scmp.lt.s32.totalorder %s3803_s28, 1  ;;  %v4013_v0 = vld [vmem:[%s357_s30] sm:$0x7]  ;;  %p5140_p3 = scmp.ne.s32.totalorder %s3803_s28, 0 }
  0x99   : > { %3707 = vsyncadd (%p5139_p8), [#allocation11], 4294965248 }
  0x9a   : > { %s401_s18 = scalar_select %p400_p2, %s3803_s28, 1 }
  0x9b   : > { %407 = sbr.rel (%p5140_p3) target bundleno = 419 (0x1a3), region = 72 }
  0x9c   : > { %s4011_s10 = scalar_lea.vmem %s5082_s4, %s401_s18 }
  0xa0   : > { %v462_v1 = vld [vmem:[%s3990_s22 + $0x170] sm:$0xff]  ;;  %v461_v2 = vld [vmem:[%s3990_s22 + $0x168] sm:$0xff]  ;;  %v459_v3 = vld [vmem:[%s3990_s22 + $0x158] sm:$0xff]  ;;  %v3737_v5 = vmov 0.0   ;;  %v465_v58 = vlaneseq }
  0xa1   : > { %480 = vmatprep.subr.mxu0 %v462_v1  ;;  %v458_v4 = vld [vmem:[%s3990_s22 + $0x150] sm:$0xff]  ;;  %544 = vmatprep.mubr.f32.mxu0 %v3737_v5  ;;  %v456_v6 = vld [vmem:[%s3990_s22 + $0x140] sm:$0xff]  ;;  %v455_v7 = vld [vmem:[%s3990_s22 + $0x138] sm:$0xff] }
  0xa2   : > { %481 = vmatpush1.msra.mxu0 %v461_v2  ;;  %v453_v8 = vld [vmem:[%s3990_s22 + $0x128] sm:$0xff]  ;;  %v452_v9 = vld [vmem:[%s3990_s22 + $0x120] sm:$0xff]  ;;  %v463_v10 = vld [vmem:[%s3990_s22 + $0x178] sm:$0xff]  ;;  %v466_v59 = vshrl.u32 %v465_v58, 7 }
  0xa3   : > { %482 = vmatprep.subr.mxu0 %v459_v3  ;;  %v450_v11 = vld [vmem:[%s3990_s22 + $0x110] sm:$0xff]  ;;  %2889 = vmatprep.subr.mxu1 %v463_v10  ;;  %v460_v12 = vld [vmem:[%s3990_s22 + $0x160] sm:$0xff]  ;;  %v449_v13 = vld [vmem:[%s3990_s22 + $0x108] sm:$0xff] }
  0xa4   : > { %483 = vmatpush1.msra.mxu0 %v458_v4  ;;  %2890 = vmatpush3.msra.mxu1 %v463_v10  ;;  %v457_v14 = vld [vmem:[%s3990_s22 + $0x148] sm:$0xff]  ;;  %v447_v15 = vld [vmem:[%s3990_s22 + $0xf8] sm:$0xff]  ;;  %v446_v16 = vld [vmem:[%s3990_s22 + $0xf0] sm:$0xff]  ;;  %v467_v60 = vsub.s32 0, %v466_v59  ;;  %v471_v61 = vsub.s32 1, %v466_v59  ;;  %v475_v63 = vsub.s32 2, %v466_v59 }
  0xa5   : > { %484 = vmatprep.subr.mxu0 %v456_v6  ;;  %2891 = vmatprep.subr.mxu1 %v460_v12  ;;  %v454_v17 = vld [vmem:[%s3990_s22 + $0x130] sm:$0xff]  ;;  %v444_v18 = vld [vmem:[%s3990_s22 + $0xe0] sm:$0xff]  ;;  %v443_v19 = vld [vmem:[%s3990_s22 + $0xd8] sm:$0xff] }
  0xa6   : > { %485 = vmatpush1.msra.mxu0 %v455_v7  ;;  %2892 = vmatpush3.msra.mxu1 %v460_v12  ;;  %v451_v20 = vld [vmem:[%s3990_s22 + $0x118] sm:$0xff]  ;;  %v441_v21 = vld [vmem:[%s3990_s22 + $0xc8] sm:$0xff]  ;;  %v440_v22 = vld [vmem:[%s3990_s22 + $0xc0] sm:$0xff]  ;;  %v4074_v62 = vrot.slane %v4013_v0, %v467_v60  ;;  %v4077_v1 = vrot.slane %v4013_v0, %v471_v61  ;;  %v476_v6 = vrot.slane %v4013_v0, %v475_v63 }
  0xa7   : > { %486 = vmatprep.subr.mxu0 %v453_v8  ;;  %2893 = vmatprep.subr.mxu1 %v457_v14  ;;  %v448_v23 = vld [vmem:[%s3990_s22 + $0x100] sm:$0xff]  ;;  %v438_v24 = vld [vmem:[%s3990_s22 + $0xb0] sm:$0xff]  ;;  %v437_v25 = vld [vmem:[%s3990_s22 + $0xa8] sm:$0xff] }
  0xa8   : > { %487 = vmatpush1.msra.mxu0 %v452_v9  ;;  %2894 = vmatpush3.msra.mxu1 %v457_v14  ;;  %v445_v26 = vld [vmem:[%s3990_s22 + $0xe8] sm:$0xff]  ;;  %v435_v27 = vld [vmem:[%s3990_s22 + $0x98] sm:$0xff]  ;;  %v434_v28 = vld [vmem:[%s3990_s22 + $0x90] sm:$0xff] }
  0xa9   : > { %488 = vmatprep.subr.mxu0 %v450_v11  ;;  %2895 = vmatprep.subr.mxu1 %v454_v17  ;;  %v442_v29 = vld [vmem:[%s3990_s22 + $0xd0] sm:$0xff]  ;;  %v432_v30 = vld [vmem:[%s3990_s22 + $0x80] sm:$0xff]  ;;  %v431_v31 = vld [vmem:[%s3990_s22 + $0x78] sm:$0xff] }
  0xaa   : > { %489 = vmatpush1.msra.mxu0 %v449_v13  ;;  %2896 = vmatpush3.msra.mxu1 %v454_v17  ;;  %v439_v32 = vld [vmem:[%s3990_s22 + $0xb8] sm:$0xff]  ;;  %v429_v33 = vld [vmem:[%s3990_s22 + $0x68] sm:$0xff]  ;;  %v428_v34 = vld [vmem:[%s3990_s22 + $0x60] sm:$0xff] }
  0xab   : > { %490 = vmatprep.subr.mxu0 %v447_v15  ;;  %2897 = vmatprep.subr.mxu1 %v451_v20  ;;  %v436_v35 = vld [vmem:[%s3990_s22 + $0xa0] sm:$0xff]  ;;  %v426_v36 = vld [vmem:[%s3990_s22 + $0x50] sm:$0xff]  ;;  %v425_v37 = vld [vmem:[%s3990_s22 + $0x48] sm:$0xff] }
  0xac   : > { %491 = vmatpush1.msra.mxu0 %v446_v16  ;;  %2898 = vmatpush3.msra.mxu1 %v451_v20  ;;  %v433_v38 = vld [vmem:[%s3990_s22 + $0x88] sm:$0xff]  ;;  %v423_v39 = vld [vmem:[%s3990_s22 + $0x38] sm:$0xff]  ;;  %v422_v40 = vld [vmem:[%s3990_s22 + $0x30] sm:$0xff] }
  0xad   : > { %492 = vmatprep.subr.mxu0 %v444_v18  ;;  %2899 = vmatprep.subr.mxu1 %v448_v23  ;;  %v430_v41 = vld [vmem:[%s3990_s22 + $0x70] sm:$0xff]  ;;  %v420_v42 = vld [vmem:[%s3990_s22 + $0x20] sm:$0xff]  ;;  %v419_v43 = vld [vmem:[%s3990_s22 + $0x18] sm:$0xff] }
  0xae   : > { %493 = vmatpush1.msra.mxu0 %v443_v19  ;;  %2900 = vmatpush3.msra.mxu1 %v448_v23  ;;  %v427_v44 = vld [vmem:[%s3990_s22 + $0x58] sm:$0xff]  ;;  %v417_v45 = vld [vmem:[%s3990_s22 + $0x8] sm:$0xff]  ;;  %v416_v46 = vld [vmem:[%s3990_s22] sm:$0xff] }
  0xaf   : > { %494 = vmatprep.subr.mxu0 %v441_v21  ;;  %2901 = vmatprep.subr.mxu1 %v445_v26  ;;  %v424_v47 = vld [vmem:[%s3990_s22 + $0x40] sm:$0xff]  ;;  %v421_v49 = vld [vmem:[%s3990_s22 + $0x28] sm:$0xff]  ;;  %v418_v50 = vld [vmem:[%s3990_s22 + $0x10] sm:$0xff] }
  0xb0   : > { %495 = vmatpush1.msra.mxu0 %v440_v22  ;;  %2902 = vmatpush3.msra.mxu1 %v445_v26  ;;  %v408_v48 = vld [vmem:[#allocation4] sm:$0xff]  ;;  %v409_v51 = vld [vmem:[#allocation4 + $0x8] sm:$0xff]  ;;  %v410_v52 = vld [vmem:[#allocation4 + $0x10] sm:$0xff] }
  0xb1   : > { %496 = vmatprep.subr.mxu0 %v438_v24  ;;  %2903 = vmatprep.subr.mxu1 %v442_v29  ;;  %v411_v53 = vld [vmem:[#allocation4 + $0x18] sm:$0xff]  ;;  %v412_v54 = vld [vmem:[#allocation4 + $0x20] sm:$0xff]  ;;  %v414_v55 = vld [vmem:[#allocation4 + $0x30] sm:$0xff] }
  0xb2   : > { %497 = vmatpush1.msra.mxu0 %v437_v25  ;;  %2904 = vmatpush3.msra.mxu1 %v442_v29  ;;  %v413_v56 = vld [vmem:[#allocation4 + $0x28] sm:$0xff]  ;;  %v415_v57 = vld [vmem:[#allocation4 + $0x38] sm:$0xff] }
  0xb3   : > { %498 = vmatprep.subr.mxu0 %v435_v27  ;;  %2905 = vmatprep.subr.mxu1 %v439_v32 }
  0xb4   : > { %499 = vmatpush1.msra.mxu0 %v434_v28  ;;  %2906 = vmatpush3.msra.mxu1 %v439_v32 }
  0xb5   : > { %500 = vmatprep.subr.mxu0 %v432_v30  ;;  %2907 = vmatprep.subr.mxu1 %v436_v35 }
  0xb6   : > { %501 = vmatpush1.msra.mxu0 %v431_v31  ;;  %2908 = vmatpush3.msra.mxu1 %v436_v35 }
  0xb7   : > { %502 = vmatprep.subr.mxu0 %v429_v33  ;;  %2909 = vmatprep.subr.mxu1 %v433_v38 }
  0xb8   : > { %503 = vmatpush1.msra.mxu0 %v428_v34  ;;  %2910 = vmatpush3.msra.mxu1 %v433_v38 }
  0xb9   : > { %504 = vmatprep.subr.mxu0 %v426_v36  ;;  %2911 = vmatprep.subr.mxu1 %v430_v41 }
  0xba   : > { %505 = vmatpush1.msra.mxu0 %v425_v37  ;;  %2912 = vmatpush3.msra.mxu1 %v430_v41 }
  0xbb   : > { %506 = vmatprep.subr.mxu0 %v423_v39  ;;  %2913 = vmatprep.subr.mxu1 %v427_v44 }
  0xbc   : > { %507 = vmatpush1.msra.mxu0 %v422_v40  ;;  %2914 = vmatpush3.msra.mxu1 %v427_v44 }
  0xbd   : > { %508 = vmatprep.subr.mxu0 %v420_v42  ;;  %2915 = vmatprep.subr.mxu1 %v424_v47 }
  0xbe   : > { %509 = vmatpush1.msra.mxu0 %v419_v43  ;;  %2916 = vmatpush3.msra.mxu1 %v424_v47 }
  0xbf   : > { %510 = vmatprep.subr.mxu0 %v417_v45  ;;  %2917 = vmatprep.subr.mxu1 %v421_v49 }
  0xc0   : > { %511 = vmatpush1.msra.mxu0 %v416_v46  ;;  %2918 = vmatpush3.msra.mxu1 %v421_v49 }
  0xc1   : > { %545 = vmatmul.mubr.f32.vlgmr.msra.gmra.mxu0 %v408_v48  ;;  %2921 = vmatprep.mubr.f32.mxu1 %v408_v48 }
  0xc2   : > { %550 = vmatprep.mubr.f32.mxu0 %v3737_v5  ;;  %2919 = vmatprep.subr.mxu1 %v418_v50 }
  0xc3   : > { %2920 = vmatpush3.msra.mxu1 %v418_v50 }
  0xc4   : > { %2922 = vmatmul.mubr.f32.vlgmr.msra.gmra.mxu1 %v409_v51 }
  0xc5   : > { %551 = vmatmul.mubr.f32.gmra.mxu0 %v409_v51  ;;  %2924 = vmatprep.mubr.f32.mxu1 %v410_v52 }
  0xc6   : > { %556 = vmatprep.mubr.f32.mxu0 %v3737_v5 }
  0xc8   : > { %2925 = vmatmul.mubr.f32.gmra.mxu1 %v411_v53 }
  0xc9   : > { %557 = vmatmul.mubr.f32.gmra.mxu0 %v410_v52  ;;  %2927 = vmatprep.mubr.f32.mxu1 %v412_v54 }
  0xca   : > { %562 = vmatprep.mubr.f32.mxu0 %v3737_v5 }
  0xcc   : > { %2928 = vmatmul.mubr.f32.gmra.mxu1 %v413_v56 }
  0xcd   : > { %563 = vmatmul.mubr.f32.gmra.mxu0 %v411_v53  ;;  %2930 = vmatprep.mubr.f32.mxu1 %v414_v55 }
  0xce   : > { %568 = vmatprep.mubr.f32.mxu0 %v3737_v5 }
  0xd0   : > { %2931 = vmatmul.mubr.f32.gmra.mxu1 %v415_v57 }
  0xd1   : > { %569 = vmatmul.mubr.f32.gmra.mxu0 %v412_v54 }
  0xd2   : > { %574 = vmatprep.mubr.f32.mxu0 %v3737_v5 }
  0xd5   : > { %575 = vmatmul.mubr.f32.gmra.mxu0 %v413_v56 }
  0xd6   : > { %580 = vmatprep.mubr.f32.mxu0 %v3737_v5 }
  0xd9   : > { %581 = vmatmul.mubr.f32.gmra.mxu0 %v414_v55 }
  0xda   : > { %586 = vmatprep.mubr.f32.mxu0 %v3737_v5 }
  0xdd   : > { %587 = vmatmul.mubr.f32.gmra.mxu0 %v415_v57 }
 0x181   : > { %v546_v2 = vpop.f32.mrf.mxu0 }
 0x182   : > { %v547_v3 = vadd.f32 %v546_v2, %v4074_v62 }
 0x183   : > { %v548_v4 = vpop.f32.mrf.mxu0 }
 0x184   : > { %698 = vst [vmem:[#allocation3] sm:$0xff] %v547_v3  ;;  %v549_v5 = vadd.f32 %v548_v4, %v4077_v1  ;;  %v2923_v9 = vpop.f32.mrf.mxu1 }
 0x185   : > { %v552_v7 = vpop.f32.mrf.mxu0  ;;  %v665_v11 = vadd.f32 %v2923_v9, %v476_v6 }
 0x186   : > { %699 = vst [vmem:[#allocation3 + $0x18] sm:$0xff] %v549_v5  ;;  %v553_v8 = vadd.f32 %v552_v7, %v4074_v62  ;;  %v659_v13 = vpop.f32.mrf.mxu1 }
 0x187   : > { %v554_v10 = vpop.f32.mrf.mxu0  ;;  %703 = vst [vmem:[#allocation3 + $0x88] sm:$0xff] %v665_v11  ;;  %v660_v15 = vadd.f32 %v659_v13, %v476_v6 }
 0x188   : > { %701 = vst [vmem:[#allocation3 + $0x58] sm:$0xff] %v553_v8  ;;  %v555_v12 = vadd.f32 %v554_v10, %v4077_v1  ;;  %v2926_v17 = vpop.f32.mrf.mxu1 }
 0x189   : > { %v558_v14 = vpop.f32.mrf.mxu0  ;;  %700 = vst [vmem:[#allocation3 + $0x50] sm:$0xff] %v660_v15  ;;  %v675_v19 = vadd.f32 %v2926_v17, %v476_v6 }
 0x18a   : > { %702 = vst [vmem:[#allocation3 + $0xb8] sm:$0xff] %v555_v12  ;;  %v559_v16 = vadd.f32 %v558_v14, %v4074_v62  ;;  %v669_v21 = vpop.f32.mrf.mxu1 }
 0x18b   : > { %v560_v18 = vpop.f32.mrf.mxu0  ;;  %709 = vst [vmem:[#allocation3 + $0x48] sm:$0xff] %v675_v19  ;;  %v670_v23 = vadd.f32 %v669_v21, %v476_v6 }
 0x18c   : > { %704 = vst [vmem:[#allocation3 + $0x30] sm:$0xff] %v559_v16  ;;  %v561_v20 = vadd.f32 %v560_v18, %v4077_v1  ;;  %v2929_v25 = vpop.f32.mrf.mxu1 }
 0x18d   : > { %v564_v22 = vpop.f32.mrf.mxu0  ;;  %706 = vst [vmem:[#allocation3 + $0x40] sm:$0xff] %v670_v23  ;;  %v685_v27 = vadd.f32 %v2929_v25, %v476_v6 }
 0x18e   : > { %705 = vst [vmem:[#allocation3 + $0x78] sm:$0xff] %v561_v20  ;;  %v565_v24 = vadd.f32 %v564_v22, %v4074_v62  ;;  %v679_v29 = vpop.f32.mrf.mxu1 }
 0x18f   : > { %v566_v26 = vpop.f32.mrf.mxu0  ;;  %715 = vst [vmem:[#allocation3 + $0x70] sm:$0xff] %v685_v27  ;;  %v680_v31 = vadd.f32 %v679_v29, %v476_v6 }
 0x190   : > { %707 = vst [vmem:[#allocation3 + $0x10] sm:$0xff] %v565_v24  ;;  %v567_v28 = vadd.f32 %v566_v26, %v4077_v1  ;;  %v2932_v33 = vpop.f32.mrf.mxu1 }
 0x191   : > { %v570_v30 = vpop.f32.mrf.mxu0  ;;  %712 = vst [vmem:[#allocation3 + $0x8] sm:$0xff] %v680_v31  ;;  %v695_v35 = vadd.f32 %v2932_v33, %v476_v6 }
 0x192   : > { %708 = vst [vmem:[#allocation3 + $0x80] sm:$0xff] %v567_v28  ;;  %v571_v32 = vadd.f32 %v570_v30, %v4074_v62  ;;  %v689_v37 = vpop.f32.mrf.mxu1 }
 0x193   : > { %v572_v34 = vpop.f32.mrf.mxu0  ;;  %721 = vst [vmem:[#allocation3 + $0x20] sm:$0xff] %v695_v35  ;;  %v690_v39 = vadd.f32 %v689_v37, %v476_v6 }
 0x194   : > { %710 = vst [vmem:[#allocation3 + $0x90] sm:$0xff] %v571_v32  ;;  %v573_v36 = vadd.f32 %v572_v34, %v4077_v1 }
 0x195   : > { %v576_v38 = vpop.f32.mrf.mxu0  ;;  %718 = vst [vmem:[#allocation3 + $0x68] sm:$0xff] %v690_v39 }
 0x196   : > { %711 = vst [vmem:[#allocation3 + $0xa8] sm:$0xff] %v573_v36  ;;  %v577_v40 = vadd.f32 %v576_v38, %v4074_v62 }
 0x197   : > { %v578_v41 = vpop.f32.mrf.mxu0 }
 0x198   : > { %713 = vst [vmem:[#allocation3 + $0x38] sm:$0xff] %v577_v40  ;;  %v579_v42 = vadd.f32 %v578_v41, %v4077_v1 }
 0x199   : > { %v582_v43 = vpop.f32.mrf.mxu0 }
 0x19a   : > { %714 = vst [vmem:[#allocation3 + $0x60] sm:$0xff] %v579_v42  ;;  %v583_v44 = vadd.f32 %v582_v43, %v4074_v62 }
 0x19b   : > { %v584_v45 = vpop.f32.mrf.mxu0 }
 0x19c   : > { %716 = vst [vmem:[#allocation3 + $0x28] sm:$0xff] %v583_v44  ;;  %v585_v46 = vadd.f32 %v584_v45, %v4077_v1 }
 0x19d   : > { %v588_v47 = vpop.f32.mrf.mxu0 }
 0x19e   : > { %717 = vst [vmem:[#allocation3 + $0xa0] sm:$0xff] %v585_v46  ;;  %v589_v48 = vadd.f32 %v588_v47, %v4074_v62 }
 0x19f   : > { %v590_v49 = vpop.f32.mrf.mxu0 }
 0x1a0   : > { %719 = vst [vmem:[#allocation3 + $0x98] sm:$0xff] %v589_v48  ;;  %v591_v50 = vadd.f32 %v590_v49, %v4077_v1 }
 0x1a2   : > { %720 = vst [vmem:[#allocation3 + $0xb0] sm:$0xff] %v591_v50 }
 0x1a3 PF: > { %p5141_p6 = scmp.eq.s32.totalorder %s3803_s28, 0 }
 0x1a5   : > { %725 = sbr.rel (%p5141_p6) target bundleno = 685 (0x2ad), region = 76 }
 0x1aa   : > { %v780_v51 = vld [vmem:[%s3990_s22 + $0x170] sm:$0xff]  ;;  %v779_v52 = vld [vmem:[%s3990_s22 + $0x168] sm:$0xff]  ;;  %v777_v53 = vld [vmem:[%s3990_s22 + $0x158] sm:$0xff]  ;;  %v3738_v55 = vmov 0.0   ;;  %v783_v45 = vlaneseq }
 0x1ab   : > { %798 = vmatprep.subr.mxu0 %v780_v51  ;;  %v776_v54 = vld [vmem:[%s3990_s22 + $0x150] sm:$0xff]  ;;  %862 = vmatprep.mubr.f32.mxu0 %v3738_v55  ;;  %v774_v56 = vld [vmem:[%s3990_s22 + $0x140] sm:$0xff]  ;;  %v773_v57 = vld [vmem:[%s3990_s22 + $0x138] sm:$0xff] }
 0x1ac   : > { %799 = vmatpush1.msra.mxu0 %v779_v52  ;;  %v771_v58 = vld [vmem:[%s3990_s22 + $0x128] sm:$0xff]  ;;  %v770_v59 = vld [vmem:[%s3990_s22 + $0x120] sm:$0xff]  ;;  %v781_v60 = vld [vmem:[%s3990_s22 + $0x178] sm:$0xff]  ;;  %v784_v46 = vshrl.u32 %v783_v45, 7 }
 0x1ad   : > { %800 = vmatprep.subr.mxu0 %v777_v53  ;;  %v768_v61 = vld [vmem:[%s3990_s22 + $0x110] sm:$0xff]  ;;  %2933 = vmatprep.subr.mxu1 %v781_v60  ;;  %v778_v62 = vld [vmem:[%s3990_s22 + $0x160] sm:$0xff]  ;;  %v767_v63 = vld [vmem:[%s3990_s22 + $0x108] sm:$0xff] }
 0x1ae   : > { %801 = vmatpush1.msra.mxu0 %v776_v54  ;;  %2934 = vmatpush3.msra.mxu1 %v781_v60  ;;  %v775_v1 = vld [vmem:[%s3990_s22 + $0x148] sm:$0xff]  ;;  %v765_v2 = vld [vmem:[%s3990_s22 + $0xf8] sm:$0xff]  ;;  %v764_v3 = vld [vmem:[%s3990_s22 + $0xf0] sm:$0xff]  ;;  %v785_v47 = vsub.s32 0, %v784_v46  ;;  %v789_v48 = vsub.s32 1, %v784_v46  ;;  %v793_v50 = vsub.s32 2, %v784_v46 }
 0x1af   : > { %802 = vmatprep.subr.mxu0 %v774_v56  ;;  %2935 = vmatprep.subr.mxu1 %v778_v62  ;;  %v772_v4 = vld [vmem:[%s3990_s22 + $0x130] sm:$0xff]  ;;  %v762_v6 = vld [vmem:[%s3990_s22 + $0xe0] sm:$0xff]  ;;  %v761_v5 = vld [vmem:[%s3990_s22 + $0xd8] sm:$0xff] }
 0x1b0   : > { %803 = vmatpush1.msra.mxu0 %v773_v57  ;;  %2936 = vmatpush3.msra.mxu1 %v778_v62  ;;  %v769_v7 = vld [vmem:[%s3990_s22 + $0x118] sm:$0xff]  ;;  %v759_v8 = vld [vmem:[%s3990_s22 + $0xc8] sm:$0xff]  ;;  %v758_v9 = vld [vmem:[%s3990_s22 + $0xc0] sm:$0xff]  ;;  %v4155_v49 = vrot.slane %v4013_v0, %v785_v47  ;;  %v4158_v51 = vrot.slane %v4013_v0, %v789_v48  ;;  %v794_v56 = vrot.slane %v4013_v0, %v793_v50 }
 0x1b1   : > { %804 = vmatprep.subr.mxu0 %v771_v58  ;;  %2937 = vmatprep.subr.mxu1 %v775_v1  ;;  %v766_v10 = vld [vmem:[%s3990_s22 + $0x100] sm:$0xff]  ;;  %v756_v11 = vld [vmem:[%s3990_s22 + $0xb0] sm:$0xff]  ;;  %v755_v12 = vld [vmem:[%s3990_s22 + $0xa8] sm:$0xff] }
 0x1b2   : > { %805 = vmatpush1.msra.mxu0 %v770_v59  ;;  %2938 = vmatpush3.msra.mxu1 %v775_v1  ;;  %v763_v13 = vld [vmem:[%s3990_s22 + $0xe8] sm:$0xff]  ;;  %v753_v14 = vld [vmem:[%s3990_s22 + $0x98] sm:$0xff]  ;;  %v752_v15 = vld [vmem:[%s3990_s22 + $0x90] sm:$0xff] }
 0x1b3   : > { %806 = vmatprep.subr.mxu0 %v768_v61  ;;  %2939 = vmatprep.subr.mxu1 %v772_v4  ;;  %v760_v16 = vld [vmem:[%s3990_s22 + $0xd0] sm:$0xff]  ;;  %v750_v17 = vld [vmem:[%s3990_s22 + $0x80] sm:$0xff]  ;;  %v749_v18 = vld [vmem:[%s3990_s22 + $0x78] sm:$0xff] }
 0x1b4   : > { %807 = vmatpush1.msra.mxu0 %v767_v63  ;;  %2940 = vmatpush3.msra.mxu1 %v772_v4  ;;  %v757_v19 = vld [vmem:[%s3990_s22 + $0xb8] sm:$0xff]  ;;  %v747_v20 = vld [vmem:[%s3990_s22 + $0x68] sm:$0xff]  ;;  %v746_v21 = vld [vmem:[%s3990_s22 + $0x60] sm:$0xff] }
 0x1b5   : > { %808 = vmatprep.subr.mxu0 %v765_v2  ;;  %2941 = vmatprep.subr.mxu1 %v769_v7  ;;  %v754_v22 = vld [vmem:[%s3990_s22 + $0xa0] sm:$0xff]  ;;  %v744_v23 = vld [vmem:[%s3990_s22 + $0x50] sm:$0xff]  ;;  %v743_v24 = vld [vmem:[%s3990_s22 + $0x48] sm:$0xff] }
 0x1b6   : > { %809 = vmatpush1.msra.mxu0 %v764_v3  ;;  %2942 = vmatpush3.msra.mxu1 %v769_v7  ;;  %v751_v25 = vld [vmem:[%s3990_s22 + $0x88] sm:$0xff]  ;;  %v741_v26 = vld [vmem:[%s3990_s22 + $0x38] sm:$0xff]  ;;  %v740_v27 = vld [vmem:[%s3990_s22 + $0x30] sm:$0xff] }
 0x1b7   : > { %810 = vmatprep.subr.mxu0 %v762_v6  ;;  %2943 = vmatprep.subr.mxu1 %v766_v10  ;;  %v748_v28 = vld [vmem:[%s3990_s22 + $0x70] sm:$0xff]  ;;  %v738_v29 = vld [vmem:[%s3990_s22 + $0x20] sm:$0xff]  ;;  %v737_v30 = vld [vmem:[%s3990_s22 + $0x18] sm:$0xff] }
 0x1b8   : > { %811 = vmatpush1.msra.mxu0 %v761_v5  ;;  %2944 = vmatpush3.msra.mxu1 %v766_v10  ;;  %v745_v31 = vld [vmem:[%s3990_s22 + $0x58] sm:$0xff]  ;;  %v735_v32 = vld [vmem:[%s3990_s22 + $0x8] sm:$0xff]  ;;  %v734_v33 = vld [vmem:[%s3990_s22] sm:$0xff] }
 0x1b9   : > { %812 = vmatprep.subr.mxu0 %v759_v8  ;;  %2945 = vmatprep.subr.mxu1 %v763_v13  ;;  %v742_v34 = vld [vmem:[%s3990_s22 + $0x40] sm:$0xff]  ;;  %v726_v35 = vld [vmem:[#allocation2 + $0x30] sm:$0xff]  ;;  %v739_v36 = vld [vmem:[%s3990_s22 + $0x28] sm:$0xff] }
 0x1ba   : > { %813 = vmatpush1.msra.mxu0 %v758_v9  ;;  %2946 = vmatpush3.msra.mxu1 %v763_v13  ;;  %v736_v37 = vld [vmem:[%s3990_s22 + $0x10] sm:$0xff]  ;;  %v727_v38 = vld [vmem:[#allocation2] sm:$0xff]  ;;  %v728_v39 = vld [vmem:[#allocation2 + $0x18] sm:$0xff] }
 0x1bb   : > { %814 = vmatprep.subr.mxu0 %v756_v11  ;;  %2947 = vmatprep.subr.mxu1 %v760_v16  ;;  %v729_v40 = vld [vmem:[#allocation2 + $0x10] sm:$0xff]  ;;  %v730_v41 = vld [vmem:[#allocation2 + $0x8] sm:$0xff]  ;;  %v731_v43 = vld [vmem:[#allocation2 + $0x20] sm:$0xff] }
 0x1bc   : > { %815 = vmatpush1.msra.mxu0 %v755_v12  ;;  %2948 = vmatpush3.msra.mxu1 %v760_v16  ;;  %v732_v42 = vld [vmem:[#allocation2 + $0x28] sm:$0xff]  ;;  %v733_v44 = vld [vmem:[#allocation2 + $0x38] sm:$0xff] }
 0x1bd   : > { %816 = vmatprep.subr.mxu0 %v753_v14  ;;  %2949 = vmatprep.subr.mxu1 %v757_v19 }
 0x1be   : > { %817 = vmatpush1.msra.mxu0 %v752_v15  ;;  %2950 = vmatpush3.msra.mxu1 %v757_v19 }
 0x1bf   : > { %818 = vmatprep.subr.mxu0 %v750_v17  ;;  %2951 = vmatprep.subr.mxu1 %v754_v22 }
 0x1c0   : > { %819 = vmatpush1.msra.mxu0 %v749_v18  ;;  %2952 = vmatpush3.msra.mxu1 %v754_v22 }
 0x1c1   : > { %820 = vmatprep.subr.mxu0 %v747_v20  ;;  %2953 = vmatprep.subr.mxu1 %v751_v25 }
 0x1c2   : > { %821 = vmatpush1.msra.mxu0 %v746_v21  ;;  %2954 = vmatpush3.msra.mxu1 %v751_v25 }
 0x1c3   : > { %822 = vmatprep.subr.mxu0 %v744_v23  ;;  %2955 = vmatprep.subr.mxu1 %v748_v28 }
 0x1c4   : > { %823 = vmatpush1.msra.mxu0 %v743_v24  ;;  %2956 = vmatpush3.msra.mxu1 %v748_v28 }
 0x1c5   : > { %824 = vmatprep.subr.mxu0 %v741_v26  ;;  %2957 = vmatprep.subr.mxu1 %v745_v31 }
 0x1c6   : > { %825 = vmatpush1.msra.mxu0 %v740_v27  ;;  %2958 = vmatpush3.msra.mxu1 %v745_v31 }
 0x1c7   : > { %826 = vmatprep.subr.mxu0 %v738_v29  ;;  %2959 = vmatprep.subr.mxu1 %v742_v34 }
 0x1c8   : > { %827 = vmatpush1.msra.mxu0 %v737_v30  ;;  %2960 = vmatpush3.msra.mxu1 %v742_v34 }
 0x1c9   : > { %828 = vmatprep.subr.mxu0 %v735_v32  ;;  %2961 = vmatprep.subr.mxu1 %v739_v36 }
 0x1ca   : > { %829 = vmatpush1.msra.mxu0 %v734_v33  ;;  %2962 = vmatpush3.msra.mxu1 %v739_v36 }
 0x1cb   : > { %863 = vmatmul.mubr.f32.vlgmr.msra.gmra.mxu0 %v726_v35  ;;  %2965 = vmatprep.mubr.f32.mxu1 %v726_v35 }
 0x1cc   : > { %868 = vmatprep.mubr.f32.mxu0 %v3738_v55  ;;  %2963 = vmatprep.subr.mxu1 %v736_v37 }
 0x1cd   : > { %2964 = vmatpush3.msra.mxu1 %v736_v37 }
 0x1ce   : > { %2966 = vmatmul.mubr.f32.vlgmr.msra.gmra.mxu1 %v727_v38 }
 0x1cf   : > { %869 = vmatmul.mubr.f32.gmra.mxu0 %v727_v38  ;;  %2968 = vmatprep.mubr.f32.mxu1 %v728_v39 }
 0x1d0   : > { %874 = vmatprep.mubr.f32.mxu0 %v3738_v55 }
 0x1d2   : > { %2969 = vmatmul.mubr.f32.gmra.mxu1 %v729_v40 }
 0x1d3   : > { %875 = vmatmul.mubr.f32.gmra.mxu0 %v728_v39  ;;  %2971 = vmatprep.mubr.f32.mxu1 %v730_v41 }
 0x1d4   : > { %880 = vmatprep.mubr.f32.mxu0 %v3738_v55 }
 0x1d6   : > { %2972 = vmatmul.mubr.f32.gmra.mxu1 %v731_v43 }
 0x1d7   : > { %881 = vmatmul.mubr.f32.gmra.mxu0 %v729_v40  ;;  %2974 = vmatprep.mubr.f32.mxu1 %v732_v42 }
 0x1d8   : > { %886 = vmatprep.mubr.f32.mxu0 %v3738_v55 }
 0x1da   : > { %2975 = vmatmul.mubr.f32.gmra.mxu1 %v733_v44 }
 0x1db   : > { %887 = vmatmul.mubr.f32.gmra.mxu0 %v730_v41 }
 0x1dc   : > { %892 = vmatprep.mubr.f32.mxu0 %v3738_v55 }
 0x1df   : > { %893 = vmatmul.mubr.f32.gmra.mxu0 %v731_v43 }
 0x1e0   : > { %898 = vmatprep.mubr.f32.mxu0 %v3738_v55 }
 0x1e3   : > { %899 = vmatmul.mubr.f32.gmra.mxu0 %v732_v42 }
 0x1e4   : > { %904 = vmatprep.mubr.f32.mxu0 %v3738_v55 }
 0x1e7   : > { %905 = vmatmul.mubr.f32.gmra.mxu0 %v733_v44 }
 0x28b   : > { %v864_v52 = vpop.f32.mrf.mxu0 }
 0x28c   : > { %v865_v53 = vadd.f32 %v864_v52, %v4155_v49 }
 0x28d   : > { %v866_v54 = vpop.f32.mrf.mxu0 }
 0x28e   : > { %1016 = vst [vmem:[#allocation3] sm:$0xff] %v865_v53  ;;  %v867_v55 = vadd.f32 %v866_v54, %v4158_v51  ;;  %v2967_v59 = vpop.f32.mrf.mxu1 }
 0x28f   : > { %v870_v57 = vpop.f32.mrf.mxu0  ;;  %v983_v61 = vadd.f32 %v2967_v59, %v794_v56 }
 0x290   : > { %1017 = vst [vmem:[#allocation3 + $0x18] sm:$0xff] %v867_v55  ;;  %v871_v58 = vadd.f32 %v870_v57, %v4155_v49  ;;  %v977_v63 = vpop.f32.mrf.mxu1 }
 0x291   : > { %v872_v60 = vpop.f32.mrf.mxu0  ;;  %1021 = vst [vmem:[#allocation3 + $0x88] sm:$0xff] %v983_v61  ;;  %v978_v2 = vadd.f32 %v977_v63, %v794_v56 }
 0x292   : > { %1019 = vst [vmem:[#allocation3 + $0x58] sm:$0xff] %v871_v58  ;;  %v873_v62 = vadd.f32 %v872_v60, %v4158_v51  ;;  %v2970_v3 = vpop.f32.mrf.mxu1 }
 0x293   : > { %v876_v1 = vpop.f32.mrf.mxu0  ;;  %1018 = vst [vmem:[#allocation3 + $0x50] sm:$0xff] %v978_v2  ;;  %v993_v6 = vadd.f32 %v2970_v3, %v794_v56 }
 0x294   : > { %1020 = vst [vmem:[#allocation3 + $0xb8] sm:$0xff] %v873_v62  ;;  %v877_v0 = vadd.f32 %v876_v1, %v4155_v49  ;;  %v987_v7 = vpop.f32.mrf.mxu1 }
 0x295   : > { %v878_v4 = vpop.f32.mrf.mxu0  ;;  %1027 = vst [vmem:[#allocation3 + $0x48] sm:$0xff] %v993_v6  ;;  %v988_v9 = vadd.f32 %v987_v7, %v794_v56 }
 0x296   : > { %1022 = vst [vmem:[#allocation3 + $0x30] sm:$0xff] %v877_v0  ;;  %v879_v5 = vadd.f32 %v878_v4, %v4158_v51  ;;  %v2973_v11 = vpop.f32.mrf.mxu1 }
 0x297   : > { %v882_v8 = vpop.f32.mrf.mxu0  ;;  %1024 = vst [vmem:[#allocation3 + $0x40] sm:$0xff] %v988_v9  ;;  %v1003_v13 = vadd.f32 %v2973_v11, %v794_v56 }
 0x298   : > { %1023 = vst [vmem:[#allocation3 + $0x78] sm:$0xff] %v879_v5  ;;  %v883_v10 = vadd.f32 %v882_v8, %v4155_v49  ;;  %v997_v15 = vpop.f32.mrf.mxu1 }
 0x299   : > { %v884_v12 = vpop.f32.mrf.mxu0  ;;  %1033 = vst [vmem:[#allocation3 + $0x70] sm:$0xff] %v1003_v13  ;;  %v998_v17 = vadd.f32 %v997_v15, %v794_v56 }
 0x29a   : > { %1025 = vst [vmem:[#allocation3 + $0x10] sm:$0xff] %v883_v10  ;;  %v885_v14 = vadd.f32 %v884_v12, %v4158_v51  ;;  %v2976_v19 = vpop.f32.mrf.mxu1 }
 0x29b   : > { %v888_v16 = vpop.f32.mrf.mxu0  ;;  %1030 = vst [vmem:[#allocation3 + $0x8] sm:$0xff] %v998_v17  ;;  %v1013_v21 = vadd.f32 %v2976_v19, %v794_v56 }
 0x29c   : > { %1026 = vst [vmem:[#allocation3 + $0x80] sm:$0xff] %v885_v14  ;;  %v889_v18 = vadd.f32 %v888_v16, %v4155_v49  ;;  %v1007_v23 = vpop.f32.mrf.mxu1 }
 0x29d   : > { %v890_v20 = vpop.f32.mrf.mxu0  ;;  %1039 = vst [vmem:[#allocation3 + $0x20] sm:$0xff] %v1013_v21  ;;  %v1008_v25 = vadd.f32 %v1007_v23, %v794_v56 }
 0x29e   : > { %1028 = vst [vmem:[#allocation3 + $0x90] sm:$0xff] %v889_v18  ;;  %v891_v22 = vadd.f32 %v890_v20, %v4158_v51 }
 0x29f   : > { %v894_v24 = vpop.f32.mrf.mxu0  ;;  %1036 = vst [vmem:[#allocation3 + $0x68] sm:$0xff] %v1008_v25 }
 0x2a0   : > { %1029 = vst [vmem:[#allocation3 + $0xa8] sm:$0xff] %v891_v22  ;;  %v895_v26 = vadd.f32 %v894_v24, %v4155_v49 }
 0x2a1   : > { %v896_v27 = vpop.f32.mrf.mxu0 }
 0x2a2   : > { %1031 = vst [vmem:[#allocation3 + $0x38] sm:$0xff] %v895_v26  ;;  %v897_v28 = vadd.f32 %v896_v27, %v4158_v51 }
 0x2a3   : > { %v900_v29 = vpop.f32.mrf.mxu0 }
 0x2a4   : > { %1032 = vst [vmem:[#allocation3 + $0x60] sm:$0xff] %v897_v28  ;;  %v901_v30 = vadd.f32 %v900_v29, %v4155_v49 }
 0x2a5   : > { %v902_v31 = vpop.f32.mrf.mxu0 }
 0x2a6   : > { %1034 = vst [vmem:[#allocation3 + $0x28] sm:$0xff] %v901_v30  ;;  %v903_v32 = vadd.f32 %v902_v31, %v4158_v51 }
 0x2a7   : > { %v906_v33 = vpop.f32.mrf.mxu0 }
 0x2a8   : > { %1035 = vst [vmem:[#allocation3 + $0xa0] sm:$0xff] %v903_v32  ;;  %v907_v34 = vadd.f32 %v906_v33, %v4155_v49 }
 0x2a9   : > { %v908_v35 = vpop.f32.mrf.mxu0 }
 0x2aa   : > { %1037 = vst [vmem:[#allocation3 + $0x98] sm:$0xff] %v907_v34  ;;  %v909_v36 = vadd.f32 %v908_v35, %v4158_v51 }
 0x2ac   : > { %1038 = vst [vmem:[#allocation3 + $0xb0] sm:$0xff] %v909_v36 }
 0x2ad PF: > { %v4178_v37 = vld [vmem:[%s3996_s24 + $0x170] sm:$0xff]  ;;  %v4181_v38 = vld [vmem:[%s3996_s24 + $0x168] sm:$0xff]  ;;  %v4184_v39 = vld [vmem:[%s3996_s24 + $0x158] sm:$0xff]  ;;  %v5097_v41 = vmov 0.0   ;;  %vm3740_vm0 = vmmov 0   ;;  %p2682_p7 = scmp.ne.s32.totalorder %s3803_s28, 1 }
 0x2ae   : > { %5142 = vst [vmem:[#allocation20_spill] sm:$0xff] %v4178_v37  ;;  %1098 = vmatprep.subr.mxu0 %v4178_v37  ;;  %v4188_v40 = vld [vmem:[%s3996_s24 + $0x150] sm:$0xff]  ;;  %2977 = vmatprep.subr.mxu1 %v5097_v41  ;;  %v4193_v42 = vld [vmem:[%s3996_s24 + $0x140] sm:$0xff]  ;;  %v4198_v43 = vld [vmem:[%s3996_s24 + $0x138] sm:$0xff] }
 0x2af   : > { %1099 = vmatpush1.msra.mxu0 %v4181_v38  ;;  %1162 = vmatprep.mubr.f32.mxu0 %v5097_v41  ;;  %v4204_v44 = vld [vmem:[%s3996_s24 + $0x128] sm:$0xff]  ;;  %v4208_v45 = vld [vmem:[%s3996_s24 + $0x120] sm:$0xff]  ;;  %v4212_v46 = vld [vmem:[%s3996_s24 + $0x110] sm:$0xff] }
 0x2b0   : > { %1100 = vmatprep.subr.mxu0 %v4184_v39  ;;  %3009 = vmatprep.mubr.msk.f32.mxu1 %vm3740_vm0, %v5097_v41  ;;  %v4216_v47 = vld [vmem:[%s3996_s24 + $0x108] sm:$0xff]  ;;  %v4220_v48 = vld [vmem:[%s3996_s24 + $0xf8] sm:$0xff]  ;;  %v4224_v49 = vld [vmem:[%s3996_s24 + $0xf0] sm:$0xff] }
 0x2b1   : > { %1101 = vmatpush1.msra.mxu0 %v4188_v40  ;;  %v4228_v50 = vld [vmem:[%s3996_s24 + $0xe0] sm:$0xff]  ;;  %v4231_v51 = vld [vmem:[%s3996_s24 + $0x178] sm:$0xff]  ;;  %v4243_v54 = vld [vmem:[%s3996_s24 + $0xc8] sm:$0xff] }
 0x2b2   : > { %1102 = vmatprep.subr.mxu0 %v4193_v42  ;;  %v4235_v52 = vld [vmem:[%s3996_s24 + $0xd8] sm:$0xff]  ;;  %2978 = vmatpush3.msra.mxu1 %v4231_v51  ;;  %v4239_v53 = vld [vmem:[%s3996_s24 + $0x160] sm:$0xff]  ;;  %v4247_v56 = vld [vmem:[%s3996_s24 + $0x148] sm:$0xff] }
 0x2b3   : > { %1103 = vmatpush1.msra.mxu0 %v4198_v43  ;;  %2979 = vmatprep.subr.mxu1 %v5097_v41  ;;  %v4251_v55 = vld [vmem:[%s3996_s24 + $0xc0] sm:$0xff]  ;;  %v4256_v57 = vld [vmem:[%s3996_s24 + $0xb0] sm:$0xff]  ;;  %v4264_v59 = vld [vmem:[%s3996_s24 + $0xa8] sm:$0xff] }
 0x2b4   : > { %1104 = vmatprep.subr.mxu0 %v4204_v44  ;;  %2980 = vmatpush3.msra.mxu1 %v4239_v53  ;;  %v4260_v58 = vld [vmem:[%s3996_s24 + $0x130] sm:$0xff]  ;;  %v4269_v60 = vld [vmem:[%s3996_s24 + $0x98] sm:$0xff]  ;;  %v4282_v63 = vld [vmem:[%s3996_s24 + $0x80] sm:$0xff] }
 0x2b5   : > { %1105 = vmatpush1.msra.mxu0 %v4208_v45  ;;  %2981 = vmatprep.subr.mxu1 %v5097_v41  ;;  %v4273_v61 = vld [vmem:[%s3996_s24 + $0x118] sm:$0xff]  ;;  %v4277_v62 = vld [vmem:[%s3996_s24 + $0x90] sm:$0xff]  ;;  %v4286_v1 = vld [vmem:[%s3996_s24 + $0x100] sm:$0xff] }
 0x2b6   : > { %1106 = vmatprep.subr.mxu0 %v4212_v46  ;;  %2982 = vmatpush3.msra.mxu1 %v4247_v56  ;;  %v4290_v2 = vld [vmem:[%s3996_s24 + $0x78] sm:$0xff]  ;;  %v4295_v0 = vld [vmem:[%s3996_s24 + $0x68] sm:$0xff]  ;;  %v4303_v4 = vld [vmem:[%s3996_s24 + $0x60] sm:$0xff] }
 0x2b7   : > { %1107 = vmatpush1.msra.mxu0 %v4216_v47  ;;  %2983 = vmatprep.subr.mxu1 %v5097_v41  ;;  %v4299_v3 = vld [vmem:[%s3996_s24 + $0xe8] sm:$0xff]  ;;  %v4308_v6 = vld [vmem:[%s3996_s24 + $0x50] sm:$0xff]  ;;  %v4321_v8 = vld [vmem:[%s3996_s24 + $0x38] sm:$0xff] }
 0x2b8   : > { %1108 = vmatprep.subr.mxu0 %v4220_v48  ;;  %2984 = vmatpush3.msra.mxu1 %v4260_v58  ;;  %v4312_v5 = vld [vmem:[%s3996_s24 + $0xd0] sm:$0xff]  ;;  %v4316_v7 = vld [vmem:[%s3996_s24 + $0x48] sm:$0xff]  ;;  %v4325_v9 = vld [vmem:[%s3996_s24 + $0xb8] sm:$0xff] }
 0x2b9   : > { %1109 = vmatpush1.msra.mxu0 %v4224_v49  ;;  %2985 = vmatprep.subr.mxu1 %v5097_v41  ;;  %v4329_v10 = vld [vmem:[%s3996_s24 + $0x30] sm:$0xff]  ;;  %v4334_v11 = vld [vmem:[%s3996_s24 + $0x20] sm:$0xff]  ;;  %v4342_v13 = vld [vmem:[%s3996_s24 + $0x18] sm:$0xff] }
 0x2ba   : > { %1110 = vmatprep.subr.mxu0 %v4228_v50  ;;  %2986 = vmatpush3.msra.mxu1 %v4273_v61  ;;  %v4338_v12 = vld [vmem:[%s3996_s24 + $0xa0] sm:$0xff]  ;;  %5143 = vst [vmem:[#allocation21_spill] sm:$0xff] %v4342_v13  ;;  %v4347_v14 = vld [vmem:[%s3996_s24 + $0x8] sm:$0xff]  ;;  %v4361_v17 = vld [vmem:[%s3996_s24 + $0x70] sm:$0xff] }
 0x2bb   : > { %1111 = vmatpush1.msra.mxu0 %v4235_v52  ;;  %2987 = vmatprep.subr.mxu1 %v5097_v41  ;;  %5144 = vst [vmem:[#allocation22_spill] sm:$0xff] %v4347_v14  ;;  %v4351_v15 = vld [vmem:[%s3996_s24 + $0x88] sm:$0xff]  ;;  %v4355_v16 = vld [vmem:[%s3996_s24] sm:$0xff]  ;;  %v4368_v18 = vld [vmem:[%s3996_s24 + $0x58] sm:$0xff] }
 0x2bc   : > { %1112 = vmatprep.subr.mxu0 %v4243_v54  ;;  %2988 = vmatpush3.msra.mxu1 %v4286_v1  ;;  %5145 = vst [vmem:[#allocation23_spill] sm:$0xff] %v4355_v16  ;;  %v4374_v19 = vld [vmem:[%s3996_s24 + $0x40] sm:$0xff]  ;;  %v4381_v20 = vld [vmem:[%s3996_s24 + $0x28] sm:$0xff]  ;;  %v4388_v21 = vld [vmem:[%s3996_s24 + $0x10] sm:$0xff] }
 0x2bd   : > { %1113 = vmatpush1.msra.mxu0 %v4251_v55  ;;  %2989 = vmatprep.subr.mxu1 %v5097_v41  ;;  %5146 = vst [vmem:[#allocation24_spill] sm:$0xff] %v4381_v20  ;;  %5147 = vst [vmem:[#allocation25_spill] sm:$0xff] %v4388_v21  ;;  %v1095_v22 = vld [vmem:[#allocation3] sm:$0xff]  ;;  %v1096_v26 = vld [vmem:[#allocation3 + $0x18] sm:$0xff] }
 0x2be   : > { %1114 = vmatprep.subr.mxu0 %v4256_v57  ;;  %2990 = vmatpush3.msra.mxu1 %v4299_v3  ;;  %v4460_v34 = vld [vmem:[%s4011_s10] ss:$0 sm:$0xff] }
 0x2bf   : > { %1115 = vmatpush1.msra.mxu0 %v4264_v59  ;;  %2991 = vmatprep.subr.mxu1 %v5097_v41 }
 0x2c0   : > { %1116 = vmatprep.subr.mxu0 %v4269_v60  ;;  %2992 = vmatpush3.msra.mxu1 %v4312_v5 }
 0x2c1   : > { %1117 = vmatpush1.msra.mxu0 %v4277_v62  ;;  %2993 = vmatprep.subr.mxu1 %v5097_v41 }
 0x2c2   : > { %1118 = vmatprep.subr.mxu0 %v4282_v63  ;;  %2994 = vmatpush3.msra.mxu1 %v4325_v9 }
 0x2c3   : > { %1119 = vmatpush1.msra.mxu0 %v4290_v2  ;;  %2995 = vmatprep.subr.mxu1 %v5097_v41 }
 0x2c4   : > { %1120 = vmatprep.subr.mxu0 %v4295_v0  ;;  %2996 = vmatpush3.msra.mxu1 %v4338_v12 }
 0x2c5   : > { %1121 = vmatpush1.msra.mxu0 %v4303_v4  ;;  %2997 = vmatprep.subr.mxu1 %v5097_v41 }
 0x2c6   : > { %1122 = vmatprep.subr.mxu0 %v4308_v6  ;;  %2998 = vmatpush3.msra.mxu1 %v4351_v15 }
 0x2c7   : > { %1123 = vmatpush1.msra.mxu0 %v4316_v7  ;;  %2999 = vmatprep.subr.mxu1 %v5097_v41 }
 0x2c8   : > { %1124 = vmatprep.subr.mxu0 %v4321_v8  ;;  %3000 = vmatpush3.msra.mxu1 %v4361_v17 }
 0x2c9   : > { %1125 = vmatpush1.msra.mxu0 %v4329_v10  ;;  %3001 = vmatprep.subr.mxu1 %v5097_v41 }
 0x2ca   : > { %1126 = vmatprep.subr.mxu0 %v4334_v11  ;;  %3002 = vmatpush3.msra.mxu1 %v4368_v18 }
 0x2cb   : > { %1127 = vmatpush1.msra.mxu0 %v4342_v13  ;;  %3003 = vmatprep.subr.mxu1 %v5097_v41 }
 0x2cc   : > { %1128 = vmatprep.subr.mxu0 %v4347_v14  ;;  %3004 = vmatpush3.msra.mxu1 %v4374_v19 }
 0x2cd   : > { %1129 = vmatpush1.msra.mxu0 %v4355_v16  ;;  %3005 = vmatprep.subr.mxu1 %v5097_v41 }
 0x2ce   : > { %1163 = vmatmul.mubr.f32.vlgmr.msra.gmra.mxu0 %v5097_v41  ;;  %1264 = vmatprep.subr.mxu0 %v4178_v37 }
 0x2cf   : > { %1265 = vmatpush1.msra.mxu0 %v4181_v38  ;;  %3006 = vmatpush3.msra.mxu1 %v4381_v20 }
 0x2d0   : > { %1266 = vmatprep.subr.mxu0 %v4184_v39  ;;  %3007 = vmatprep.subr.mxu1 %v5097_v41 }
 0x2d1   : > { %1267 = vmatpush1.msra.mxu0 %v4188_v40  ;;  %3008 = vmatpush3.msra.mxu1 %v4388_v21 }
 0x2d2   : > { %1268 = vmatprep.subr.mxu0 %v4193_v42  ;;  %3010 = vmatmul.mubr.f32.vlgmr.msra.gmra.mxu1 %v5097_v41 }
 0x2d3   : > { %1269 = vmatpush1.msra.mxu0 %v4198_v43  ;;  %3012 = vmatprep.subr.mxu1 %v5097_v41 }
 0x2d4   : > { %1270 = vmatprep.subr.mxu0 %v4204_v44  ;;  %3013 = vmatpush3.msra.mxu1 %v4231_v51 }
 0x2d5   : > { %1271 = vmatpush1.msra.mxu0 %v4208_v45  ;;  %3014 = vmatprep.subr.mxu1 %v5097_v41 }
 0x2d6   : > { %1272 = vmatprep.subr.mxu0 %v4212_v46  ;;  %3015 = vmatpush3.msra.mxu1 %v4239_v53 }
 0x2d7   : > { %1273 = vmatpush1.msra.mxu0 %v4216_v47  ;;  %3016 = vmatprep.subr.mxu1 %v5097_v41 }
 0x2d8   : > { %1274 = vmatprep.subr.mxu0 %v4220_v48  ;;  %3017 = vmatpush3.msra.mxu1 %v4247_v56 }
 0x2d9   : > { %1275 = vmatpush1.msra.mxu0 %v4224_v49  ;;  %3018 = vmatprep.subr.mxu1 %v5097_v41 }
 0x2da   : > { %1276 = vmatprep.subr.mxu0 %v4228_v50  ;;  %3019 = vmatpush3.msra.mxu1 %v4260_v58 }
 0x2db   : > { %1277 = vmatpush1.msra.mxu0 %v4235_v52  ;;  %3020 = vmatprep.subr.mxu1 %v5097_v41 }
 0x2dc   : > { %1278 = vmatprep.subr.mxu0 %v4243_v54  ;;  %3021 = vmatpush3.msra.mxu1 %v4273_v61 }
 0x2dd   : > { %1279 = vmatpush1.msra.mxu0 %v4251_v55  ;;  %3022 = vmatprep.subr.mxu1 %v5097_v41 }
 0x2de   : > { %1280 = vmatprep.subr.mxu0 %v4256_v57  ;;  %3023 = vmatpush3.msra.mxu1 %v4286_v1 }
 0x2df   : > { %1281 = vmatpush1.msra.mxu0 %v4264_v59  ;;  %3024 = vmatprep.subr.mxu1 %v5097_v41 }
 0x2e0   : > { %1282 = vmatprep.subr.mxu0 %v4269_v60  ;;  %3025 = vmatpush3.msra.mxu1 %v4299_v3 }
 0x2e1   : > { %1283 = vmatpush1.msra.mxu0 %v4277_v62  ;;  %3026 = vmatprep.subr.mxu1 %v5097_v41 }
 0x2e2   : > { %1284 = vmatprep.subr.mxu0 %v4282_v63  ;;  %3027 = vmatpush3.msra.mxu1 %v4312_v5 }
 0x2e3   : > { %1285 = vmatpush1.msra.mxu0 %v4290_v2  ;;  %3028 = vmatprep.subr.mxu1 %v5097_v41 }
 0x2e4   : > { %1286 = vmatprep.subr.mxu0 %v4295_v0  ;;  %3029 = vmatpush3.msra.mxu1 %v4325_v9 }
 0x2e5   : > { %1287 = vmatpush1.msra.mxu0 %v4303_v4  ;;  %3030 = vmatprep.subr.mxu1 %v5097_v41 }
 0x2e6   : > { %1288 = vmatprep.subr.mxu0 %v4308_v6  ;;  %3031 = vmatpush3.msra.mxu1 %v4338_v12 }
 0x2e7   : > { %1289 = vmatpush1.msra.mxu0 %v4316_v7  ;;  %3032 = vmatprep.subr.mxu1 %v5097_v41 }
 0x2e8   : > { %1290 = vmatprep.subr.mxu0 %v4321_v8  ;;  %3033 = vmatpush3.msra.mxu1 %v4351_v15 }
 0x2e9   : > { %1291 = vmatpush1.msra.mxu0 %v4329_v10  ;;  %3034 = vmatprep.subr.mxu1 %v5097_v41 }
 0x2ea   : > { %1292 = vmatprep.subr.mxu0 %v4334_v11  ;;  %3035 = vmatpush3.msra.mxu1 %v4361_v17 }
 0x2eb   : > { %1293 = vmatpush1.msra.mxu0 %v4342_v13  ;;  %3036 = vmatprep.subr.mxu1 %v5097_v41 }
 0x2ec   : > { %1294 = vmatprep.subr.mxu0 %v4347_v14  ;;  %3037 = vmatpush3.msra.mxu1 %v4368_v18 }
 0x2ed   : > { %1295 = vmatpush1.msra.mxu0 %v4355_v16  ;;  %1328 = vmatprep.mubr.f32.mxu0 %v5097_v41 }
 0x2ee   : > { %3038 = vmatprep.subr.mxu1 %v5097_v41  ;;  %3044 = vmatprep.mubr.msk.f32.mxu1 %vm3740_vm0, %v5097_v41 }
 0x2ef   : > { %3039 = vmatpush3.msra.mxu1 %v4374_v19  ;;  %1430 = vmatprep.subr.mxu0 %v4178_v37  ;;  %v1097_v37 = vld [vmem:[#allocation3 + $0x50] sm:$0xff] }
 0x2f0   : > { %3040 = vmatprep.subr.mxu1 %v5097_v41 }
 0x2f1   : > { %3041 = vmatpush3.msra.mxu1 %v4381_v20 }
 0x2f2   : > { %3042 = vmatprep.subr.mxu1 %v5097_v41 }
 0x2f3   : > { %3043 = vmatpush3.msra.mxu1 %v4388_v21 }
 0x2f4   : > { %3047 = vmatprep.subr.mxu1 %v5097_v41 }
 0x38e   : > { %v1164_v23 = vpop.f32.mrf.mxu0 }
 0x38f   : > { %v1239_v24 = vadd.f32 %v1164_v23, %v1095_v22 }
 0x390   : > { %v1166_v27 = vpop.f32.mrf.mxu0 }
 0x391   : > { %v2666_v25 = vmul.f32 -1.442695, %v1239_v24  ;;  %v1240_v30 = vadd.f32 %v1166_v27, %v1096_v26 }
 0x392   : > { %v1235_v28 = vpop.f32.mrf.mxu1 }
 0x393   : > { %3387 = vpow2.f32 %v2666_v25  ;;  %v2667_v31 = vmul.f32 -1.442695, %v1240_v30  ;;  %v1253_v35 = vadd.f32 %v4460_v34, %v1235_v28  ;;  %v1261_v28 = vld [vmem:[#allocation3 + $0x58] sm:$0xff] }
 0x394   : > { %v3011_v29 = vpop.f32.mrf.mxu1 }
 0x395   : > { %3389 = vpow2.f32 %v2667_v31 }
 0x3a0   : > { %v3388_v32 = vpop.eup %3387 }
 0x3a1   : > { %v1247_v33 = vadd.f32 1.0, %v3388_v32 }
 0x3a2   : > { %v3390_v36 = vpop.eup %3389 }
 0x3a3   : > { %3391 = vrcp.f32 %v1247_v33  ;;  %v1248_v23 = vadd.f32 1.0, %v3390_v36 }
 0x3b0   : > { %v3392_v41 = vpop.eup %3391 }
 0x3b1   : > { %v1254_v22 = vmul.f32 %v3392_v41, %v1253_v35  ;;  %v5149_v41 = vld [vmem:[#allocation20_spill] sm:$0xff] }
 0x3b3   : > { %v1255_v24 = vadd.f32 %v1254_v22, %v1097_v37  ;;  %v5148_v37 = vmov 0.0   ;;  %v1262_v22 = vld [vmem:[#allocation3 + $0xb8] sm:$0xff] }
 0x3b5   : > { %3393 = vtanh.f32 %v1255_v24 }
 0x3b6   : > { %3395 = vrcp.f32 %v1248_v23 }
 0x3c2   : > { %v3394_v25 = vpop.eup %3393 }
 0x3c3   : > { %v1257_v29 = vsub.f32 0.0, %v3394_v25  ;;  %v3396_v26 = vpop.eup %3395 }
 0x3c5   : > { %v1258_v27 = vmul.f32 %v3396_v26, %v1257_v29 }
 0x3c7   : > { %v4463_v30 = vadd.f32 %v3394_v25, %v1258_v27 }
 0x3c9   : > { %1260 = vst [vmem:[#allocation2 + $0x30] sm:$0xff] %v4463_v30  ;;  %1329 = vmatmul.mubr.f32.vlgmr.msra.gmra.mxu0 %v4463_v30  ;;  %3045 = vmatmul.mubr.f32.vlgmr.msra.gmra.mxu1 %v4463_v30 }
 0x3ca   : > { %1431 = vmatpush1.msra.mxu0 %v4181_v38  ;;  %3048 = vmatpush3.msra.mxu1 %v4231_v51 }
 0x3cb   : > { %1432 = vmatprep.subr.mxu0 %v4184_v39  ;;  %3049 = vmatprep.subr.mxu1 %v5148_v37 }
 0x3cc   : > { %1433 = vmatpush1.msra.mxu0 %v4188_v40  ;;  %3050 = vmatpush3.msra.mxu1 %v4239_v53 }
 0x3cd   : > { %1434 = vmatprep.subr.mxu0 %v4193_v42  ;;  %3051 = vmatprep.subr.mxu1 %v5148_v37 }
 0x3ce   : > { %1435 = vmatpush1.msra.mxu0 %v4198_v43  ;;  %3052 = vmatpush3.msra.mxu1 %v4247_v56 }
 0x3cf   : > { %1436 = vmatprep.subr.mxu0 %v4204_v44  ;;  %3053 = vmatprep.subr.mxu1 %v5148_v37 }
 0x3d0   : > { %1437 = vmatpush1.msra.mxu0 %v4208_v45  ;;  %3054 = vmatpush3.msra.mxu1 %v4260_v58 }
 0x3d1   : > { %1438 = vmatprep.subr.mxu0 %v4212_v46  ;;  %3055 = vmatprep.subr.mxu1 %v5148_v37 }
 0x3d2   : > { %1439 = vmatpush1.msra.mxu0 %v4216_v47  ;;  %3056 = vmatpush3.msra.mxu1 %v4273_v61 }
 0x3d3   : > { %1440 = vmatprep.subr.mxu0 %v4220_v48  ;;  %3057 = vmatprep.subr.mxu1 %v5148_v37 }
 0x3d4   : > { %1441 = vmatpush1.msra.mxu0 %v4224_v49  ;;  %3058 = vmatpush3.msra.mxu1 %v4286_v1 }
 0x3d5   : > { %1442 = vmatprep.subr.mxu0 %v4228_v50  ;;  %3059 = vmatprep.subr.mxu1 %v5148_v37 }
 0x3d6   : > { %1443 = vmatpush1.msra.mxu0 %v4235_v52  ;;  %3060 = vmatpush3.msra.mxu1 %v4299_v3 }
 0x3d7   : > { %1444 = vmatprep.subr.mxu0 %v4243_v54  ;;  %3061 = vmatprep.subr.mxu1 %v5148_v37 }
 0x3d8   : > { %1445 = vmatpush1.msra.mxu0 %v4251_v55  ;;  %3062 = vmatpush3.msra.mxu1 %v4312_v5 }
 0x3d9   : > { %1446 = vmatprep.subr.mxu0 %v4256_v57  ;;  %3063 = vmatprep.subr.mxu1 %v5148_v37 }
 0x3da   : > { %1447 = vmatpush1.msra.mxu0 %v4264_v59  ;;  %3064 = vmatpush3.msra.mxu1 %v4325_v9 }
 0x3db   : > { %1448 = vmatprep.subr.mxu0 %v4269_v60  ;;  %3065 = vmatprep.subr.mxu1 %v5148_v37 }
 0x3dc   : > { %1449 = vmatpush1.msra.mxu0 %v4277_v62  ;;  %3066 = vmatpush3.msra.mxu1 %v4338_v12 }
 0x3dd   : > { %1450 = vmatprep.subr.mxu0 %v4282_v63  ;;  %3067 = vmatprep.subr.mxu1 %v5148_v37 }
 0x3de   : > { %1451 = vmatpush1.msra.mxu0 %v4290_v2  ;;  %3068 = vmatpush3.msra.mxu1 %v4351_v15 }
 0x3df   : > { %1452 = vmatprep.subr.mxu0 %v4295_v0  ;;  %3069 = vmatprep.subr.mxu1 %v5148_v37 }
 0x3e0   : > { %1453 = vmatpush1.msra.mxu0 %v4303_v4  ;;  %3070 = vmatpush3.msra.mxu1 %v4361_v17 }
 0x3e1   : > { %1454 = vmatprep.subr.mxu0 %v4308_v6  ;;  %3071 = vmatprep.subr.mxu1 %v5148_v37 }
 0x3e2   : > { %1455 = vmatpush1.msra.mxu0 %v4316_v7  ;;  %3072 = vmatpush3.msra.mxu1 %v4368_v18 }
 0x3e3   : > { %1456 = vmatprep.subr.mxu0 %v4321_v8  ;;  %3073 = vmatprep.subr.mxu1 %v5148_v37 }
 0x3e4   : > { %1457 = vmatpush1.msra.mxu0 %v4329_v10  ;;  %3074 = vmatpush3.msra.mxu1 %v4374_v19 }
 0x3e5   : > { %1458 = vmatprep.subr.mxu0 %v4334_v11  ;;  %3075 = vmatprep.subr.mxu1 %v5148_v37 }
 0x3e6   : > { %1459 = vmatpush1.msra.mxu0 %v4342_v13  ;;  %3076 = vmatpush3.msra.mxu1 %v4381_v20 }
 0x3e7   : > { %1460 = vmatprep.subr.mxu0 %v4347_v14  ;;  %3077 = vmatprep.subr.mxu1 %v5148_v37 }
 0x3e8   : > { %1461 = vmatpush1.msra.mxu0 %v4355_v16  ;;  %1494 = vmatprep.mubr.f32.mxu0 %v5148_v37  ;;  %v1263_v16 = vld [vmem:[#allocation3 + $0x88] sm:$0xff] }
 0x3e9   : > { %3078 = vmatpush3.msra.mxu1 %v4388_v21  ;;  %3079 = vmatprep.mubr.msk.f32.mxu1 %vm3740_vm0, %v5148_v37 }
 0x3ea   : > { %1596 = vmatprep.subr.mxu0 %v5149_v41  ;;  %3082 = vmatprep.subr.mxu1 %v5148_v37 }
 0x489   : > { %v1330_v31 = vpop.f32.mrf.mxu0  ;;  %v1401_v32 = vpop.f32.mrf.mxu1 }
 0x48a   : > { %v1405_v33 = vadd.f32 %v1330_v31, %v1261_v28  ;;  %v1419_v41 = vadd.f32 %v4460_v34, %v1401_v32 }
 0x48b   : > { %v3046_v35 = vpop.f32.mrf.mxu1  ;;  %v1332_v23 = vpop.f32.mrf.mxu0 }
 0x48c   : > { %v2668_v36 = vmul.f32 -1.442695, %v1405_v33  ;;  %v1406_v24 = vadd.f32 %v1332_v23, %v1262_v22 }
 0x48e   : > { %3397 = vpow2.f32 %v2668_v36  ;;  %v2669_v25 = vmul.f32 -1.442695, %v1406_v24 }
 0x490   : > { %3399 = vpow2.f32 %v2669_v25 }
 0x49b   : > { %v3398_v29 = vpop.eup %3397 }
 0x49c   : > { %v1413_v26 = vadd.f32 1.0, %v3398_v29  ;;  %v1428_v29 = vld [vmem:[#allocation3 + $0x78] sm:$0xff] }
 0x49d   : > { %v3400_v27 = vpop.eup %3399 }
 0x49e   : > { %3401 = vrcp.f32 %v1413_v26  ;;  %v1414_v13 = vadd.f32 1.0, %v3400_v27 }
 0x4ab   : > { %v3402_v21 = vpop.eup %3401 }
 0x4ac   : > { %v1420_v14 = vmul.f32 %v3402_v21, %v1419_v41  ;;  %v5154_v21 = vld [vmem:[#allocation25_spill] sm:$0xff] }
 0x4ad   : > { %v1427_v41 = vld [vmem:[#allocation3 + $0x30] sm:$0xff] }
 0x4ae   : > { %v1421_v20 = vadd.f32 %v1420_v14, %v1263_v16  ;;  %v5151_v14 = vld [vmem:[#allocation24_spill] sm:$0xff]  ;;  %v5152_v16 = vld [vmem:[#allocation22_spill] sm:$0xff] }
 0x4b0   : > { %3403 = vtanh.f32 %v1421_v20  ;;  %v5153_v20 = vld [vmem:[#allocation23_spill] sm:$0xff] }
 0x4b1   : > { %3405 = vrcp.f32 %v1414_v13  ;;  %v5150_v13 = vld [vmem:[#allocation21_spill] sm:$0xff] }
 0x4bd   : > { %v3404_v28 = vpop.eup %3403 }
 0x4be   : > { %v1423_v31 = vsub.f32 %v4463_v30, %v3404_v28  ;;  %v3406_v33 = vpop.eup %3405  ;;  %v5155_v30 = vld [vmem:[#allocation20_spill] sm:$0xff] }
 0x4c0   : > { %v1424_v35 = vmul.f32 %v3406_v33, %v1423_v31 }
 0x4c2   : > { %v4537_v36 = vadd.f32 %v3404_v28, %v1424_v35 }
 0x4c4   : > { %1426 = vst [vmem:[#allocation2] sm:$0xff] %v4537_v36  ;;  %1495 = vmatmul.mubr.f32.vlgmr.msra.gmra.mxu0 %v4537_v36  ;;  %3080 = vmatmul.mubr.f32.vlgmr.msra.gmra.mxu1 %v4537_v36 }
 0x4c5   : > { %1597 = vmatpush1.msra.mxu0 %v4181_v38  ;;  %3083 = vmatpush3.msra.mxu1 %v4231_v51 }
 0x4c6   : > { %1598 = vmatprep.subr.mxu0 %v4184_v39  ;;  %3084 = vmatprep.subr.mxu1 %v5148_v37 }
 0x4c7   : > { %1599 = vmatpush1.msra.mxu0 %v4188_v40  ;;  %3085 = vmatpush3.msra.mxu1 %v4239_v53 }
 0x4c8   : > { %1600 = vmatprep.subr.mxu0 %v4193_v42  ;;  %3086 = vmatprep.subr.mxu1 %v5148_v37 }
 0x4c9   : > { %1601 = vmatpush1.msra.mxu0 %v4198_v43  ;;  %3087 = vmatpush3.msra.mxu1 %v4247_v56 }
 0x4ca   : > { %1602 = vmatprep.subr.mxu0 %v4204_v44  ;;  %3088 = vmatprep.subr.mxu1 %v5148_v37 }
 0x4cb   : > { %1603 = vmatpush1.msra.mxu0 %v4208_v45  ;;  %3089 = vmatpush3.msra.mxu1 %v4260_v58 }
 0x4cc   : > { %1604 = vmatprep.subr.mxu0 %v4212_v46  ;;  %3090 = vmatprep.subr.mxu1 %v5148_v37 }
 0x4cd   : > { %1605 = vmatpush1.msra.mxu0 %v4216_v47  ;;  %3091 = vmatpush3.msra.mxu1 %v4273_v61 }
 0x4ce   : > { %1606 = vmatprep.subr.mxu0 %v4220_v48  ;;  %3092 = vmatprep.subr.mxu1 %v5148_v37 }
 0x4cf   : > { %1607 = vmatpush1.msra.mxu0 %v4224_v49  ;;  %3093 = vmatpush3.msra.mxu1 %v4286_v1 }
 0x4d0   : > { %1608 = vmatprep.subr.mxu0 %v4228_v50  ;;  %3094 = vmatprep.subr.mxu1 %v5148_v37 }
 0x4d1   : > { %1609 = vmatpush1.msra.mxu0 %v4235_v52  ;;  %3095 = vmatpush3.msra.mxu1 %v4299_v3 }
 0x4d2   : > { %1610 = vmatprep.subr.mxu0 %v4243_v54  ;;  %3096 = vmatprep.subr.mxu1 %v5148_v37 }
 0x4d3   : > { %1611 = vmatpush1.msra.mxu0 %v4251_v55  ;;  %3097 = vmatpush3.msra.mxu1 %v4312_v5 }
 0x4d4   : > { %1612 = vmatprep.subr.mxu0 %v4256_v57  ;;  %3098 = vmatprep.subr.mxu1 %v5148_v37 }
 0x4d5   : > { %1613 = vmatpush1.msra.mxu0 %v4264_v59  ;;  %3099 = vmatpush3.msra.mxu1 %v4325_v9 }
 0x4d6   : > { %1614 = vmatprep.subr.mxu0 %v4269_v60  ;;  %3100 = vmatprep.subr.mxu1 %v5148_v37 }
 0x4d7   : > { %1615 = vmatpush1.msra.mxu0 %v4277_v62  ;;  %3101 = vmatpush3.msra.mxu1 %v4338_v12 }
 0x4d8   : > { %1616 = vmatprep.subr.mxu0 %v4282_v63  ;;  %3102 = vmatprep.subr.mxu1 %v5148_v37 }
 0x4d9   : > { %1617 = vmatpush1.msra.mxu0 %v4290_v2  ;;  %3103 = vmatpush3.msra.mxu1 %v4351_v15 }
 0x4da   : > { %1618 = vmatprep.subr.mxu0 %v4295_v0  ;;  %3104 = vmatprep.subr.mxu1 %v5148_v37 }
 0x4db   : > { %1619 = vmatpush1.msra.mxu0 %v4303_v4  ;;  %3105 = vmatpush3.msra.mxu1 %v4361_v17 }
 0x4dc   : > { %1620 = vmatprep.subr.mxu0 %v4308_v6  ;;  %3106 = vmatprep.subr.mxu1 %v5148_v37 }
 0x4dd   : > { %1621 = vmatpush1.msra.mxu0 %v4316_v7  ;;  %3107 = vmatpush3.msra.mxu1 %v4368_v18 }
 0x4de   : > { %1622 = vmatprep.subr.mxu0 %v4321_v8  ;;  %3108 = vmatprep.subr.mxu1 %v5148_v37 }
 0x4df   : > { %1623 = vmatpush1.msra.mxu0 %v4329_v10  ;;  %3109 = vmatpush3.msra.mxu1 %v4374_v19 }
 0x4e0   : > { %1624 = vmatprep.subr.mxu0 %v4334_v11  ;;  %3110 = vmatprep.subr.mxu1 %v5148_v37 }
 0x4e1   : > { %1625 = vmatpush1.msra.mxu0 %v5150_v13  ;;  %3111 = vmatpush3.msra.mxu1 %v5151_v14 }
 0x4e2   : > { %1626 = vmatprep.subr.mxu0 %v5152_v16  ;;  %3112 = vmatprep.subr.mxu1 %v5148_v37 }
 0x4e3   : > { %1627 = vmatpush1.msra.mxu0 %v5153_v20  ;;  %1660 = vmatprep.mubr.f32.mxu0 %v5148_v37  ;;  %v1429_v20 = vld [vmem:[#allocation3 + $0x40] sm:$0xff] }
 0x4e4   : > { %3113 = vmatpush3.msra.mxu1 %v5154_v21  ;;  %3114 = vmatprep.mubr.msk.f32.mxu1 %vm3740_vm0, %v5148_v37 }
 0x4e5   : > { %1762 = vmatprep.subr.mxu0 %v5155_v30  ;;  %3117 = vmatprep.subr.mxu1 %v5148_v37 }
 0x584   : > { %v1496_v32 = vpop.f32.mrf.mxu0  ;;  %v1567_v22 = vpop.f32.mrf.mxu1 }
 0x585   : > { %v1571_v23 = vadd.f32 %v1496_v32, %v1427_v41  ;;  %v1585_v30 = vadd.f32 %v4460_v34, %v1567_v22 }
 0x586   : > { %v3081_v24 = vpop.f32.mrf.mxu1  ;;  %v1498_v26 = vpop.f32.mrf.mxu0 }
 0x587   : > { %v2670_v25 = vmul.f32 -1.442695, %v1571_v23  ;;  %v1572_v27 = vadd.f32 %v1498_v26, %v1428_v29 }
 0x589   : > { %3407 = vpow2.f32 %v2670_v25  ;;  %v2671_v28 = vmul.f32 -1.442695, %v1572_v27  ;;  %v1594_v27 = vld [vmem:[#allocation3 + $0x80] sm:$0xff] }
 0x58b   : > { %3409 = vpow2.f32 %v2671_v28 }
 0x596   : > { %v3408_v31 = vpop.eup %3407 }
 0x597   : > { %v1579_v33 = vadd.f32 1.0, %v3408_v31 }
 0x598   : > { %v3410_v35 = vpop.eup %3409 }
 0x599   : > { %3411 = vrcp.f32 %v1579_v33  ;;  %v1580_v13 = vadd.f32 1.0, %v3410_v35 }
 0x5a6   : > { %v3412_v21 = vpop.eup %3411 }
 0x5a7   : > { %v1586_v16 = vmul.f32 %v3412_v21, %v1585_v30 }
 0x5a9   : > { %v1587_v14 = vadd.f32 %v1586_v16, %v1429_v20  ;;  %v5161_v16 = vld [vmem:[#allocation20_spill] sm:$0xff] }
 0x5aa   : > { %v1593_v20 = vld [vmem:[#allocation3 + $0x10] sm:$0xff] }
 0x5ab   : > { %3413 = vtanh.f32 %v1587_v14  ;;  %v5160_v14 = vld [vmem:[#allocation25_spill] sm:$0xff] }
 0x5ac   : > { %3415 = vrcp.f32 %v1580_v13  ;;  %v5159_v13 = vld [vmem:[#allocation23_spill] sm:$0xff] }
 0x5b8   : > { %v3414_v41 = vpop.eup %3413 }
 0x5b9   : > { %v1589_v32 = vsub.f32 %v4537_v36, %v3414_v41  ;;  %v3416_v23 = vpop.eup %3415  ;;  %v5158_v36 = vld [vmem:[#allocation22_spill] sm:$0xff] }
 0x5bb   : > { %v1590_v24 = vmul.f32 %v3416_v23, %v1589_v32 }
 0x5bd   : > { %v4611_v25 = vadd.f32 %v3414_v41, %v1590_v24 }
 0x5bf   : > { %1592 = vst [vmem:[#allocation2 + $0x18] sm:$0xff] %v4611_v25  ;;  %1661 = vmatmul.mubr.f32.vlgmr.msra.gmra.mxu0 %v4611_v25  ;;  %3115 = vmatmul.mubr.f32.vlgmr.msra.gmra.mxu1 %v4611_v25 }
 0x5c0   : > { %1763 = vmatpush1.msra.mxu0 %v4181_v38  ;;  %3118 = vmatpush3.msra.mxu1 %v4231_v51  ;;  %v5156_v38 = vld [vmem:[#allocation21_spill] sm:$0xff] }
 0x5c1   : > { %1764 = vmatprep.subr.mxu0 %v4184_v39  ;;  %3119 = vmatprep.subr.mxu1 %v5148_v37  ;;  %v5157_v39 = vld [vmem:[#allocation24_spill] sm:$0xff] }
 0x5c2   : > { %1765 = vmatpush1.msra.mxu0 %v4188_v40  ;;  %3120 = vmatpush3.msra.mxu1 %v4239_v53 }
 0x5c3   : > { %1766 = vmatprep.subr.mxu0 %v4193_v42  ;;  %3121 = vmatprep.subr.mxu1 %v5148_v37 }
 0x5c4   : > { %1767 = vmatpush1.msra.mxu0 %v4198_v43  ;;  %3122 = vmatpush3.msra.mxu1 %v4247_v56 }
 0x5c5   : > { %1768 = vmatprep.subr.mxu0 %v4204_v44  ;;  %3123 = vmatprep.subr.mxu1 %v5148_v37 }
 0x5c6   : > { %1769 = vmatpush1.msra.mxu0 %v4208_v45  ;;  %3124 = vmatpush3.msra.mxu1 %v4260_v58 }
 0x5c7   : > { %1770 = vmatprep.subr.mxu0 %v4212_v46  ;;  %3125 = vmatprep.subr.mxu1 %v5148_v37 }
 0x5c8   : > { %1771 = vmatpush1.msra.mxu0 %v4216_v47  ;;  %3126 = vmatpush3.msra.mxu1 %v4273_v61 }
 0x5c9   : > { %1772 = vmatprep.subr.mxu0 %v4220_v48  ;;  %3127 = vmatprep.subr.mxu1 %v5148_v37 }
 0x5ca   : > { %1773 = vmatpush1.msra.mxu0 %v4224_v49  ;;  %3128 = vmatpush3.msra.mxu1 %v4286_v1 }
 0x5cb   : > { %1774 = vmatprep.subr.mxu0 %v4228_v50  ;;  %3129 = vmatprep.subr.mxu1 %v5148_v37 }
 0x5cc   : > { %1775 = vmatpush1.msra.mxu0 %v4235_v52  ;;  %3130 = vmatpush3.msra.mxu1 %v4299_v3 }
 0x5cd   : > { %1776 = vmatprep.subr.mxu0 %v4243_v54  ;;  %3131 = vmatprep.subr.mxu1 %v5148_v37 }
 0x5ce   : > { %1777 = vmatpush1.msra.mxu0 %v4251_v55  ;;  %3132 = vmatpush3.msra.mxu1 %v4312_v5 }
 0x5cf   : > { %1778 = vmatprep.subr.mxu0 %v4256_v57  ;;  %3133 = vmatprep.subr.mxu1 %v5148_v37 }
 0x5d0   : > { %1779 = vmatpush1.msra.mxu0 %v4264_v59  ;;  %3134 = vmatpush3.msra.mxu1 %v4325_v9 }
 0x5d1   : > { %1780 = vmatprep.subr.mxu0 %v4269_v60  ;;  %3135 = vmatprep.subr.mxu1 %v5148_v37 }
 0x5d2   : > { %1781 = vmatpush1.msra.mxu0 %v4277_v62  ;;  %3136 = vmatpush3.msra.mxu1 %v4338_v12 }
 0x5d3   : > { %1782 = vmatprep.subr.mxu0 %v4282_v63  ;;  %3137 = vmatprep.subr.mxu1 %v5148_v37 }
 0x5d4   : > { %1783 = vmatpush1.msra.mxu0 %v4290_v2  ;;  %3138 = vmatpush3.msra.mxu1 %v4351_v15 }
 0x5d5   : > { %1784 = vmatprep.subr.mxu0 %v4295_v0  ;;  %3139 = vmatprep.subr.mxu1 %v5148_v37 }
 0x5d6   : > { %1785 = vmatpush1.msra.mxu0 %v4303_v4  ;;  %3140 = vmatpush3.msra.mxu1 %v4361_v17 }
 0x5d7   : > { %1786 = vmatprep.subr.mxu0 %v4308_v6  ;;  %3141 = vmatprep.subr.mxu1 %v5148_v37 }
 0x5d8   : > { %1787 = vmatpush1.msra.mxu0 %v4316_v7  ;;  %3142 = vmatpush3.msra.mxu1 %v4368_v18 }
 0x5d9   : > { %1788 = vmatprep.subr.mxu0 %v4321_v8  ;;  %3143 = vmatprep.subr.mxu1 %v5148_v37 }
 0x5da   : > { %1789 = vmatpush1.msra.mxu0 %v4329_v10  ;;  %3144 = vmatpush3.msra.mxu1 %v4374_v19 }
 0x5db   : > { %1790 = vmatprep.subr.mxu0 %v4334_v11  ;;  %3145 = vmatprep.subr.mxu1 %v5148_v37 }
 0x5dc   : > { %1791 = vmatpush1.msra.mxu0 %v5156_v38  ;;  %3146 = vmatpush3.msra.mxu1 %v5157_v39 }
 0x5dd   : > { %1792 = vmatprep.subr.mxu0 %v5158_v36  ;;  %3147 = vmatprep.subr.mxu1 %v5148_v37 }
 0x5de   : > { %1793 = vmatpush1.msra.mxu0 %v5159_v13  ;;  %1826 = vmatprep.mubr.f32.mxu0 %v5148_v37 }
 0x5df   : > { %3148 = vmatpush3.msra.mxu1 %v5160_v14  ;;  %3149 = vmatprep.mubr.msk.f32.mxu1 %vm3740_vm0, %v5148_v37 }
 0x5e0   : > { %1928 = vmatprep.subr.mxu0 %v5161_v16  ;;  %3152 = vmatprep.subr.mxu1 %v5148_v37  ;;  %v1595_v16 = vld [vmem:[#allocation3 + $0x48] sm:$0xff] }
 0x67f   : > { %v1662_v21 = vpop.f32.mrf.mxu0  ;;  %v1733_v30 = vpop.f32.mrf.mxu1 }
 0x680   : > { %v1737_v22 = vadd.f32 %v1662_v21, %v1593_v20  ;;  %v1751_v23 = vadd.f32 %v4460_v34, %v1733_v30  ;;  %v4691_v30 = vld [vmem:[%s3996_s24 + $0x168] sm:$0xff] }
 0x681   : > { %v3116_v29 = vpop.f32.mrf.mxu1  ;;  %v1664_v28 = vpop.f32.mrf.mxu0 }
 0x682   : > { %v2672_v26 = vmul.f32 -1.442695, %v1737_v22  ;;  %v1738_v31 = vadd.f32 %v1664_v28, %v1594_v27 }
 0x684   : > { %3417 = vpow2.f32 %v2672_v26  ;;  %v2673_v33 = vmul.f32 -1.442695, %v1738_v31  ;;  %v4859_v31 = vld [vmem:[%s3996_s24 + $0xc0] sm:$0xff] }
 0x686   : > { %3419 = vpow2.f32 %v2673_v33  ;;  %v4863_v33 = vld [vmem:[%s3996_s24 + $0xd0] sm:$0xff] }
 0x691   : > { %v3418_v35 = vpop.eup %3417 }
 0x692   : > { %v1745_v41 = vadd.f32 1.0, %v3418_v35  ;;  %v4867_v35 = vld [vmem:[%s3996_s24 + $0xb0] sm:$0xff] }
 0x693   : > { %v3420_v32 = vpop.eup %3419 }
 0x694   : > { %3421 = vrcp.f32 %v1745_v41  ;;  %v1746_v21 = vadd.f32 1.0, %v3420_v32  ;;  %v4872_v41 = vld [vmem:[%s3996_s24 + $0xa8] sm:$0xff]  ;;  %v4876_v32 = vld [vmem:[%s3996_s24 + $0xb8] sm:$0xff] }
 0x6a1   : > { %v3422_v24 = vpop.eup %3421 }
 0x6a2   : > { %v1752_v14 = vmul.f32 %v3422_v24, %v1751_v23  ;;  %v4880_v23 = vld [vmem:[%s3996_s24 + $0x98] sm:$0xff]  ;;  %v4885_v24 = vld [vmem:[%s3996_s24 + $0x90] sm:$0xff] }
 0x6a4   : > { %v1753_v20 = vadd.f32 %v1752_v14, %v1595_v16  ;;  %v4696_v14 = vld [vmem:[%s3996_s24 + $0x158] sm:$0xff]  ;;  %v4889_v16 = vld [vmem:[%s3996_s24 + $0xa0] sm:$0xff] }
 0x6a6   : > { %3423 = vtanh.f32 %v1753_v20  ;;  %v4893_v20 = vld [vmem:[%s3996_s24 + $0x80] sm:$0xff] }
 0x6a7   : > { %3425 = vrcp.f32 %v1746_v21  ;;  %v4898_v21 = vld [vmem:[%s3996_s24 + $0x78] sm:$0xff] }
 0x6b3   : > { %v3424_v22 = vpop.eup %3423 }
 0x6b4   : > { %v1755_v29 = vsub.f32 %v4611_v25, %v3424_v22  ;;  %v3426_v26 = vpop.eup %3425  ;;  %v4837_v25 = vld [vmem:[%s3996_s24 + $0x100] sm:$0xff] }
 0x6b6   : > { %v1756_v27 = vmul.f32 %v3426_v26, %v1755_v29  ;;  %v4906_v29 = vld [vmem:[%s3996_s24 + $0x68] sm:$0xff]  ;;  %v4911_v26 = vld [vmem:[%s3996_s24 + $0x60] sm:$0xff] }
 0x6b8   : > { %v4685_v28 = vadd.f32 %v3424_v22, %v1756_v27  ;;  %v4902_v22 = vld [vmem:[%s3996_s24 + $0x88] sm:$0xff]  ;;  %v4915_v27 = vld [vmem:[%s3996_s24 + $0x70] sm:$0xff] }
 0x6ba   : > { %1758 = vst [vmem:[#allocation2 + $0x10] sm:$0xff] %v4685_v28  ;;  %1827 = vmatmul.mubr.f32.vlgmr.msra.gmra.mxu0 %v4685_v28  ;;  %3150 = vmatmul.mubr.f32.vlgmr.msra.gmra.mxu1 %v4685_v28 }
 0x6bb   : > { %1929 = vmatpush1.msra.mxu0 %v4691_v30  ;;  %3153 = vmatpush3.msra.mxu1 %v4231_v51 }
 0x6bc   : > { %1930 = vmatprep.subr.mxu0 %v4696_v14  ;;  %3154 = vmatprep.subr.mxu1 %v5148_v37 }
 0x6bd   : > { %1931 = vmatpush1.msra.mxu0 %v4188_v40  ;;  %3155 = vmatpush3.msra.mxu1 %v4239_v53  ;;  %v5162_v40 = vld [vmem:[#allocation25_spill] sm:$0xff] }
 0x6be   : > { %1932 = vmatprep.subr.mxu0 %v4193_v42  ;;  %3156 = vmatprep.subr.mxu1 %v5148_v37  ;;  %v4762_v42 = vld [vmem:[%s3996_s24 + $0x170] sm:$0xff] }
 0x6bf   : > { %1933 = vmatpush1.msra.mxu0 %v4198_v43  ;;  %3157 = vmatpush3.msra.mxu1 %v4247_v56  ;;  %v1759_v43 = vld [vmem:[#allocation3 + $0x90] sm:$0xff] }
 0x6c0   : > { %1934 = vmatprep.subr.mxu0 %v4204_v44  ;;  %3158 = vmatprep.subr.mxu1 %v5148_v37 }
 0x6c1   : > { %1935 = vmatpush1.msra.mxu0 %v4208_v45  ;;  %3159 = vmatpush3.msra.mxu1 %v4260_v58  ;;  %v1761_v58 = vld [vmem:[#allocation3 + $0x8] sm:$0xff] }
 0x6c2   : > { %1936 = vmatprep.subr.mxu0 %v4212_v46  ;;  %3160 = vmatprep.subr.mxu1 %v5148_v37 }
 0x6c3   : > { %1937 = vmatpush1.msra.mxu0 %v4216_v47  ;;  %3161 = vmatpush3.msra.mxu1 %v4273_v61 }
 0x6c4   : > { %1938 = vmatprep.subr.mxu0 %v4220_v48  ;;  %3162 = vmatprep.subr.mxu1 %v5148_v37 }
 0x6c5   : > { %1939 = vmatpush1.msra.mxu0 %v4224_v49  ;;  %3163 = vmatpush3.msra.mxu1 %v4286_v1  ;;  %v1760_v49 = vld [vmem:[#allocation3 + $0xa8] sm:$0xff] }
 0x6c6   : > { %1940 = vmatprep.subr.mxu0 %v4228_v50  ;;  %3164 = vmatprep.subr.mxu1 %v5148_v37 }
 0x6c7   : > { %1941 = vmatpush1.msra.mxu0 %v4235_v52  ;;  %3165 = vmatpush3.msra.mxu1 %v4299_v3  ;;  %v4775_v3 = vld [vmem:[%s3996_s24 + $0x178] sm:$0xff] }
 0x6c8   : > { %1942 = vmatprep.subr.mxu0 %v4243_v54  ;;  %3166 = vmatprep.subr.mxu1 %v5148_v37 }
 0x6c9   : > { %1943 = vmatpush1.msra.mxu0 %v4251_v55  ;;  %3167 = vmatpush3.msra.mxu1 %v4312_v5  ;;  %v4789_v5 = vld [vmem:[%s3996_s24 + $0x140] sm:$0xff] }
 0x6ca   : > { %1944 = vmatprep.subr.mxu0 %v4256_v57  ;;  %3168 = vmatprep.subr.mxu1 %v5148_v37 }
 0x6cb   : > { %1945 = vmatpush1.msra.mxu0 %v4264_v59  ;;  %3169 = vmatpush3.msra.mxu1 %v4325_v9  ;;  %v4802_v9 = vld [vmem:[%s3996_s24 + $0x128] sm:$0xff] }
 0x6cc   : > { %1946 = vmatprep.subr.mxu0 %v4269_v60  ;;  %3170 = vmatprep.subr.mxu1 %v5148_v37 }
 0x6cd   : > { %1947 = vmatpush1.msra.mxu0 %v4277_v62  ;;  %3171 = vmatpush3.msra.mxu1 %v4338_v12  ;;  %v4815_v12 = vld [vmem:[%s3996_s24 + $0x110] sm:$0xff] }
 0x6ce   : > { %1948 = vmatprep.subr.mxu0 %v4282_v63  ;;  %3172 = vmatprep.subr.mxu1 %v5148_v37 }
 0x6cf   : > { %1949 = vmatpush1.msra.mxu0 %v4290_v2  ;;  %3173 = vmatpush3.msra.mxu1 %v4351_v15  ;;  %v4820_v15 = vld [vmem:[%s3996_s24 + $0x108] sm:$0xff] }
 0x6d0   : > { %1950 = vmatprep.subr.mxu0 %v4295_v0  ;;  %3174 = vmatprep.subr.mxu1 %v5148_v37 }
 0x6d1   : > { %1951 = vmatpush1.msra.mxu0 %v4303_v4  ;;  %3175 = vmatpush3.msra.mxu1 %v4361_v17  ;;  %v4781_v4 = vld [vmem:[%s3996_s24 + $0x150] sm:$0xff]  ;;  %v4824_v17 = vld [vmem:[%s3996_s24 + $0x118] sm:$0xff] }
 0x6d2   : > { %1952 = vmatprep.subr.mxu0 %v4308_v6  ;;  %3176 = vmatprep.subr.mxu1 %v5148_v37  ;;  %v4785_v6 = vld [vmem:[%s3996_s24 + $0x160] sm:$0xff] }
 0x6d3   : > { %1953 = vmatpush1.msra.mxu0 %v4316_v7  ;;  %3177 = vmatpush3.msra.mxu1 %v4368_v18  ;;  %v4794_v7 = vld [vmem:[%s3996_s24 + $0x138] sm:$0xff] }
 0x6d4   : > { %1954 = vmatprep.subr.mxu0 %v4321_v8  ;;  %3178 = vmatprep.subr.mxu1 %v5148_v37  ;;  %v4798_v8 = vld [vmem:[%s3996_s24 + $0x148] sm:$0xff]  ;;  %v4828_v18 = vld [vmem:[%s3996_s24 + $0xf8] sm:$0xff] }
 0x6d5   : > { %1955 = vmatpush1.msra.mxu0 %v4329_v10  ;;  %3179 = vmatpush3.msra.mxu1 %v4374_v19  ;;  %v4807_v10 = vld [vmem:[%s3996_s24 + $0x120] sm:$0xff]  ;;  %v4833_v19 = vld [vmem:[%s3996_s24 + $0xf0] sm:$0xff] }
 0x6d6   : > { %1956 = vmatprep.subr.mxu0 %v4334_v11  ;;  %3180 = vmatprep.subr.mxu1 %v5148_v37  ;;  %v4811_v11 = vld [vmem:[%s3996_s24 + $0x130] sm:$0xff] }
 0x6d7   : > { %1957 = vmatpush1.msra.mxu0 %v5156_v38  ;;  %3181 = vmatpush3.msra.mxu1 %v5157_v39  ;;  %v4841_v38 = vld [vmem:[%s3996_s24 + $0xe0] sm:$0xff]  ;;  %v4846_v39 = vld [vmem:[%s3996_s24 + $0xd8] sm:$0xff] }
 0x6d8   : > { %1958 = vmatprep.subr.mxu0 %v5158_v36  ;;  %3182 = vmatprep.subr.mxu1 %v5148_v37  ;;  %v4850_v36 = vld [vmem:[%s3996_s24 + $0xe8] sm:$0xff] }
 0x6d9   : > { %1959 = vmatpush1.msra.mxu0 %v5159_v13  ;;  %1992 = vmatprep.mubr.f32.mxu0 %v5148_v37  ;;  %v4854_v13 = vld [vmem:[%s3996_s24 + $0xc8] sm:$0xff] }
 0x6da   : > { %3183 = vmatpush3.msra.mxu1 %v5162_v40  ;;  %3184 = vmatprep.mubr.msk.f32.mxu1 %vm3740_vm0, %v5148_v37  ;;  %v4924_v40 = vld [vmem:[%s3996_s24 + $0x48] sm:$0xff] }
 0x6db   : > { %2094 = vmatprep.subr.mxu0 %v4762_v42  ;;  %3187 = vmatprep.subr.mxu1 %v5148_v37 }
 0x77a   : > { %v1828_v44 = vpop.f32.mrf.mxu0  ;;  %v1899_v45 = vpop.f32.mrf.mxu1 }
 0x77b   : > { %v1903_v46 = vadd.f32 %v1828_v44, %v1759_v43  ;;  %v1917_v55 = vadd.f32 %v4460_v34, %v1899_v45  ;;  %v4928_v43 = vld [vmem:[%s3996_s24 + $0x58] sm:$0xff]  ;;  %v4937_v45 = vld [vmem:[%s3996_s24 + $0x30] sm:$0xff] }
 0x77c   : > { %v3151_v47 = vpop.f32.mrf.mxu1  ;;  %v1830_v50 = vpop.f32.mrf.mxu0  ;;  %v4932_v44 = vld [vmem:[%s3996_s24 + $0x38] sm:$0xff] }
 0x77d   : > { %v2674_v48 = vmul.f32 -1.442695, %v1903_v46  ;;  %v1904_v51 = vadd.f32 %v1830_v50, %v1760_v49  ;;  %v4941_v46 = vld [vmem:[%s3996_s24 + $0x40] sm:$0xff]  ;;  %v4954_v49 = vld [vmem:[%s3996_s24 + $0x28] sm:$0xff] }
 0x77e   : > { %v4945_v47 = vld [vmem:[%s3996_s24 + $0x20] sm:$0xff]  ;;  %5164 = vst [vmem:[#allocation24_spill] sm:$0xff] %v4954_v49  ;;  %v4958_v50 = vld [vmem:[%s3996_s24 + $0x8] sm:$0xff] }
 0x77f   : > { %3427 = vpow2.f32 %v2674_v48  ;;  %v2675_v52 = vmul.f32 -1.442695, %v1904_v51  ;;  %v4950_v48 = vld [vmem:[%s3996_s24 + $0x18] sm:$0xff]  ;;  %5165 = vst [vmem:[#allocation22_spill] sm:$0xff] %v4958_v50  ;;  %v4963_v51 = vld [vmem:[%s3996_s24] sm:$0xff] }
 0x780   : > { %5163 = vst [vmem:[#allocation21_spill] sm:$0xff] %v4950_v48  ;;  %5166 = vst [vmem:[#allocation23_spill] sm:$0xff] %v4963_v51 }
 0x781   : > { %3429 = vpow2.f32 %v2675_v52  ;;  %v4968_v52 = vld [vmem:[%s3996_s24 + $0x10] sm:$0xff] }
 0x782   : > { %5167 = vst [vmem:[#allocation20_spill] sm:$0xff] %v4968_v52 }
 0x78c   : > { %v3428_v53 = vpop.eup %3427 }
 0x78d   : > { %v1911_v54 = vadd.f32 1.0, %v3428_v53  ;;  %v1925_v53 = vld [vmem:[#allocation3 + $0x38] sm:$0xff] }
 0x78e   : > { %v3430_v56 = vpop.eup %3429 }
 0x78f   : > { %3431 = vrcp.f32 %v1911_v54  ;;  %v1912_v61 = vadd.f32 1.0, %v3430_v56 }
 0x79c   : > { %v3432_v57 = vpop.eup %3431 }
 0x79d   : > { %v1918_v59 = vmul.f32 %v3432_v57, %v1917_v55 }
 0x79f   : > { %v1919_v60 = vadd.f32 %v1918_v59, %v1761_v58  ;;  %v1926_v59 = vld [vmem:[#allocation3 + $0x60] sm:$0xff] }
 0x7a1   : > { %3433 = vtanh.f32 %v1919_v60 }
 0x7a2   : > { %3435 = vrcp.f32 %v1912_v61 }
 0x7ae   : > { %v3434_v62 = vpop.eup %3433 }
 0x7af   : > { %v1921_v63 = vsub.f32 %v4685_v28, %v3434_v62  ;;  %v3436_v1 = vpop.eup %3435  ;;  %v4919_v28 = vld [vmem:[%s3996_s24 + $0x50] sm:$0xff] }
 0x7b1   : > { %v1922_v2 = vmul.f32 %v3436_v1, %v1921_v63 }
 0x7b3   : > { %v4768_v0 = vadd.f32 %v3434_v62, %v1922_v2 }
 0x7b5   : > { %1924 = vst [vmem:[#allocation2 + $0x8] sm:$0xff] %v4768_v0  ;;  %1993 = vmatmul.mubr.f32.vlgmr.msra.gmra.mxu0 %v4768_v0  ;;  %3185 = vmatmul.mubr.f32.vlgmr.msra.gmra.mxu1 %v4768_v0 }
 0x7b6   : > { %2095 = vmatpush1.msra.mxu0 %v4691_v30  ;;  %3188 = vmatpush3.msra.mxu1 %v4775_v3 }
 0x7b7   : > { %2096 = vmatprep.subr.mxu0 %v4696_v14  ;;  %3189 = vmatprep.subr.mxu1 %v5148_v37 }
 0x7b8   : > { %2097 = vmatpush1.msra.mxu0 %v4781_v4  ;;  %3190 = vmatpush3.msra.mxu1 %v4785_v6 }
 0x7b9   : > { %2098 = vmatprep.subr.mxu0 %v4789_v5  ;;  %3191 = vmatprep.subr.mxu1 %v5148_v37 }
 0x7ba   : > { %2099 = vmatpush1.msra.mxu0 %v4794_v7  ;;  %3192 = vmatpush3.msra.mxu1 %v4798_v8 }
 0x7bb   : > { %2100 = vmatprep.subr.mxu0 %v4802_v9  ;;  %3193 = vmatprep.subr.mxu1 %v5148_v37 }
 0x7bc   : > { %2101 = vmatpush1.msra.mxu0 %v4807_v10  ;;  %3194 = vmatpush3.msra.mxu1 %v4811_v11 }
 0x7bd   : > { %2102 = vmatprep.subr.mxu0 %v4815_v12  ;;  %3195 = vmatprep.subr.mxu1 %v5148_v37 }
 0x7be   : > { %2103 = vmatpush1.msra.mxu0 %v4820_v15  ;;  %3196 = vmatpush3.msra.mxu1 %v4824_v17 }
 0x7bf   : > { %2104 = vmatprep.subr.mxu0 %v4828_v18  ;;  %3197 = vmatprep.subr.mxu1 %v5148_v37 }
 0x7c0   : > { %2105 = vmatpush1.msra.mxu0 %v4833_v19  ;;  %3198 = vmatpush3.msra.mxu1 %v4837_v25 }
 0x7c1   : > { %2106 = vmatprep.subr.mxu0 %v4841_v38  ;;  %3199 = vmatprep.subr.mxu1 %v5148_v37 }
 0x7c2   : > { %2107 = vmatpush1.msra.mxu0 %v4846_v39  ;;  %3200 = vmatpush3.msra.mxu1 %v4850_v36 }
 0x7c3   : > { %2108 = vmatprep.subr.mxu0 %v4854_v13  ;;  %3201 = vmatprep.subr.mxu1 %v5148_v37 }
 0x7c4   : > { %2109 = vmatpush1.msra.mxu0 %v4859_v31  ;;  %3202 = vmatpush3.msra.mxu1 %v4863_v33 }
 0x7c5   : > { %2110 = vmatprep.subr.mxu0 %v4867_v35  ;;  %3203 = vmatprep.subr.mxu1 %v5148_v37 }
 0x7c6   : > { %2111 = vmatpush1.msra.mxu0 %v4872_v41  ;;  %3204 = vmatpush3.msra.mxu1 %v4876_v32 }
 0x7c7   : > { %2112 = vmatprep.subr.mxu0 %v4880_v23  ;;  %3205 = vmatprep.subr.mxu1 %v5148_v37 }
 0x7c8   : > { %2113 = vmatpush1.msra.mxu0 %v4885_v24  ;;  %3206 = vmatpush3.msra.mxu1 %v4889_v16 }
 0x7c9   : > { %2114 = vmatprep.subr.mxu0 %v4893_v20  ;;  %3207 = vmatprep.subr.mxu1 %v5148_v37 }
 0x7ca   : > { %2115 = vmatpush1.msra.mxu0 %v4898_v21  ;;  %3208 = vmatpush3.msra.mxu1 %v4902_v22 }
 0x7cb   : > { %2116 = vmatprep.subr.mxu0 %v4906_v29  ;;  %3209 = vmatprep.subr.mxu1 %v5148_v37 }
 0x7cc   : > { %2117 = vmatpush1.msra.mxu0 %v4911_v26  ;;  %3210 = vmatpush3.msra.mxu1 %v4915_v27 }
 0x7cd   : > { %2118 = vmatprep.subr.mxu0 %v4919_v28  ;;  %3211 = vmatprep.subr.mxu1 %v5148_v37 }
 0x7ce   : > { %2119 = vmatpush1.msra.mxu0 %v4924_v40  ;;  %3212 = vmatpush3.msra.mxu1 %v4928_v43 }
 0x7cf   : > { %2120 = vmatprep.subr.mxu0 %v4932_v44  ;;  %3213 = vmatprep.subr.mxu1 %v5148_v37 }
 0x7d0   : > { %2121 = vmatpush1.msra.mxu0 %v4937_v45  ;;  %3214 = vmatpush3.msra.mxu1 %v4941_v46 }
 0x7d1   : > { %2122 = vmatprep.subr.mxu0 %v4945_v47  ;;  %3215 = vmatprep.subr.mxu1 %v5148_v37 }
 0x7d2   : > { %2123 = vmatpush1.msra.mxu0 %v4950_v48  ;;  %3216 = vmatpush3.msra.mxu1 %v4954_v49 }
 0x7d3   : > { %2124 = vmatprep.subr.mxu0 %v4958_v50  ;;  %3217 = vmatprep.subr.mxu1 %v5148_v37 }
 0x7d4   : > { %2125 = vmatpush1.msra.mxu0 %v4963_v51  ;;  %2158 = vmatprep.mubr.f32.mxu0 %v5148_v37  ;;  %v1927_v51 = vld [vmem:[#allocation3 + $0x70] sm:$0xff] }
 0x7d5   : > { %3218 = vmatpush3.msra.mxu1 %v4968_v52  ;;  %3219 = vmatprep.mubr.msk.f32.mxu1 %vm3740_vm0, %v5148_v37 }
 0x7d6   : > { %2260 = vmatprep.subr.mxu0 %v4762_v42  ;;  %3222 = vmatprep.subr.mxu1 %v5148_v37 }
 0x875   : > { %v1994_v54 = vpop.f32.mrf.mxu0  ;;  %v2065_v56 = vpop.f32.mrf.mxu1 }
 0x876   : > { %v2069_v55 = vadd.f32 %v1994_v54, %v1925_v53  ;;  %v2083_v42 = vadd.f32 %v4460_v34, %v2065_v56  ;;  %v5168_v34 = vld [vmem:[#allocation21_spill] sm:$0xff] }
 0x877   : > { %v3186_v57 = vpop.f32.mrf.mxu1  ;;  %v1996_v60 = vpop.f32.mrf.mxu0 }
 0x878   : > { %v2676_v58 = vmul.f32 -1.442695, %v2069_v55  ;;  %v2070_v61 = vadd.f32 %v1996_v60, %v1926_v59 }
 0x87a   : > { %3437 = vpow2.f32 %v2676_v58  ;;  %v2677_v62 = vmul.f32 -1.442695, %v2070_v61 }
 0x87c   : > { %3439 = vpow2.f32 %v2677_v62 }
 0x887   : > { %v3438_v63 = vpop.eup %3437 }
 0x888   : > { %v2077_v1 = vadd.f32 1.0, %v3438_v63 }
 0x889   : > { %v3440_v2 = vpop.eup %3439 }
 0x88a   : > { %3441 = vrcp.f32 %v2077_v1  ;;  %v2078_v48 = vadd.f32 1.0, %v3440_v2 }
 0x897   : > { %v3442_v52 = vpop.eup %3441 }
 0x898   : > { %v2084_v50 = vmul.f32 %v3442_v52, %v2083_v42 }
 0x89a   : > { %v2085_v49 = vadd.f32 %v2084_v50, %v1927_v51 }
 0x89c   : > { %3443 = vtanh.f32 %v2085_v49 }
 0x89d   : > { %3445 = vrcp.f32 %v2078_v48  ;;  %v2259_v48 = vld [vmem:[#allocation3 + $0x20] sm:$0xff] }
 0x8a9   : > { %v3444_v53 = vpop.eup %3443 }
 0x8aa   : > { %v2087_v54 = vsub.f32 %v4768_v0, %v3444_v53  ;;  %v3446_v55 = vpop.eup %3445  ;;  %v5171_v0 = vld [vmem:[#allocation23_spill] sm:$0xff] }
 0x8ac   : > { %v2088_v57 = vmul.f32 %v3446_v55, %v2087_v54 }
 0x8ae   : > { %v4977_v58 = vadd.f32 %v3444_v53, %v2088_v57 }
 0x8b0   : > { %2090 = vst [vmem:[#allocation2 + $0x20] sm:$0xff] %v4977_v58  ;;  %2159 = vmatmul.mubr.f32.vlgmr.msra.gmra.mxu0 %v4977_v58  ;;  %3220 = vmatmul.mubr.f32.vlgmr.msra.gmra.mxu1 %v4977_v58 }
 0x8b1   : > { %2261 = vmatpush1.msra.mxu0 %v4691_v30  ;;  %3223 = vmatpush3.msra.mxu1 %v4775_v3  ;;  %v5169_v30 = vld [vmem:[#allocation24_spill] sm:$0xff] }
 0x8b2   : > { %2262 = vmatprep.subr.mxu0 %v4696_v14  ;;  %3224 = vmatprep.subr.mxu1 %v5148_v37  ;;  %v5170_v14 = vld [vmem:[#allocation22_spill] sm:$0xff]  ;;  %v5172_v3 = vld [vmem:[#allocation20_spill] sm:$0xff] }
 0x8b3   : > { %2263 = vmatpush1.msra.mxu0 %v4781_v4  ;;  %3225 = vmatpush3.msra.mxu1 %v4785_v6  ;;  %v2091_v4 = vld [vmem:[#allocation3 + $0x28] sm:$0xff] }
 0x8b4   : > { %2264 = vmatprep.subr.mxu0 %v4789_v5  ;;  %3226 = vmatprep.subr.mxu1 %v5148_v37 }
 0x8b5   : > { %2265 = vmatpush1.msra.mxu0 %v4794_v7  ;;  %3227 = vmatpush3.msra.mxu1 %v4798_v8 }
 0x8b6   : > { %2266 = vmatprep.subr.mxu0 %v4802_v9  ;;  %3228 = vmatprep.subr.mxu1 %v5148_v37 }
 0x8b7   : > { %2267 = vmatpush1.msra.mxu0 %v4807_v10  ;;  %3229 = vmatpush3.msra.mxu1 %v4811_v11  ;;  %v2092_v10 = vld [vmem:[#allocation3 + $0xa0] sm:$0xff] }
 0x8b8   : > { %2268 = vmatprep.subr.mxu0 %v4815_v12  ;;  %3230 = vmatprep.subr.mxu1 %v5148_v37 }
 0x8b9   : > { %2269 = vmatpush1.msra.mxu0 %v4820_v15  ;;  %3231 = vmatpush3.msra.mxu1 %v4824_v17 }
 0x8ba   : > { %2270 = vmatprep.subr.mxu0 %v4828_v18  ;;  %3232 = vmatprep.subr.mxu1 %v5148_v37 }
 0x8bb   : > { %2271 = vmatpush1.msra.mxu0 %v4833_v19  ;;  %3233 = vmatpush3.msra.mxu1 %v4837_v25  ;;  %v3515_v25 = vld [vmem:[%s4011_s10] ss:$0 sm:$0xff] }
 0x8bc   : > { %2272 = vmatprep.subr.mxu0 %v4841_v38  ;;  %3234 = vmatprep.subr.mxu1 %v5148_v37 }
 0x8bd   : > { %2273 = vmatpush1.msra.mxu0 %v4846_v39  ;;  %3235 = vmatpush3.msra.mxu1 %v4850_v36  ;;  %v2093_v39 = vld [vmem:[#allocation3 + $0x68] sm:$0xff] }
 0x8be   : > { %2274 = vmatprep.subr.mxu0 %v4854_v13  ;;  %3236 = vmatprep.subr.mxu1 %v5148_v37 }
 0x8bf   : > { %2275 = vmatpush1.msra.mxu0 %v4859_v31  ;;  %3237 = vmatpush3.msra.mxu1 %v4863_v33 }
 0x8c0   : > { %2276 = vmatprep.subr.mxu0 %v4867_v35  ;;  %3238 = vmatprep.subr.mxu1 %v5148_v37 }
 0x8c1   : > { %2277 = vmatpush1.msra.mxu0 %v4872_v41  ;;  %3239 = vmatpush3.msra.mxu1 %v4876_v32 }
 0x8c2   : > { %2278 = vmatprep.subr.mxu0 %v4880_v23  ;;  %3240 = vmatprep.subr.mxu1 %v5148_v37 }
 0x8c3   : > { %2279 = vmatpush1.msra.mxu0 %v4885_v24  ;;  %3241 = vmatpush3.msra.mxu1 %v4889_v16  ;;  %v2257_v24 = vld [vmem:[#allocation3 + $0x98] sm:$0xff] }
 0x8c4   : > { %2280 = vmatprep.subr.mxu0 %v4893_v20  ;;  %3242 = vmatprep.subr.mxu1 %v5148_v37 }
 0x8c5   : > { %2281 = vmatpush1.msra.mxu0 %v4898_v21  ;;  %3243 = vmatpush3.msra.mxu1 %v4902_v22 }
 0x8c6   : > { %2282 = vmatprep.subr.mxu0 %v4906_v29  ;;  %3244 = vmatprep.subr.mxu1 %v5148_v37 }
 0x8c7   : > { %2283 = vmatpush1.msra.mxu0 %v4911_v26  ;;  %3245 = vmatpush3.msra.mxu1 %v4915_v27  ;;  %v2258_v26 = vld [vmem:[#allocation3 + $0xb0] sm:$0xff] }
 0x8c8   : > { %2284 = vmatprep.subr.mxu0 %v4919_v28  ;;  %3246 = vmatprep.subr.mxu1 %v5148_v37 }
 0x8c9   : > { %2285 = vmatpush1.msra.mxu0 %v4924_v40  ;;  %3247 = vmatpush3.msra.mxu1 %v4928_v43 }
 0x8ca   : > { %2286 = vmatprep.subr.mxu0 %v4932_v44  ;;  %3248 = vmatprep.subr.mxu1 %v5148_v37 }
 0x8cb   : > { %2287 = vmatpush1.msra.mxu0 %v4937_v45  ;;  %3249 = vmatpush3.msra.mxu1 %v4941_v46 }
 0x8cc   : > { %2288 = vmatprep.subr.mxu0 %v4945_v47  ;;  %3250 = vmatprep.subr.mxu1 %v5148_v37 }
 0x8cd   : > { %2289 = vmatpush1.msra.mxu0 %v5168_v34  ;;  %3251 = vmatpush3.msra.mxu1 %v5169_v30 }
 0x8ce   : > { %2290 = vmatprep.subr.mxu0 %v5170_v14  ;;  %3252 = vmatprep.subr.mxu1 %v5148_v37 }
 0x8cf   : > { %2291 = vmatpush1.msra.mxu0 %v5171_v0  ;;  %2324 = vmatprep.mubr.f32.mxu0 %v5148_v37 }
 0x8d0   : > { %3253 = vmatpush3.msra.mxu1 %v5172_v3  ;;  %3254 = vmatprep.mubr.msk.f32.mxu1 %vm3740_vm0, %v5148_v37 }
 0x970   : > { %v2160_v6 = vpop.f32.mrf.mxu0  ;;  %v2231_v5 = vpop.f32.mrf.mxu1 }
 0x971   : > { %v2235_v7 = vadd.f32 %v2160_v6, %v2091_v4  ;;  %v2249_v38 = vadd.f32 %v3515_v25, %v2231_v5 }
 0x972   : > { %v3221_v8 = vpop.f32.mrf.mxu1  ;;  %v2162_v11 = vpop.f32.mrf.mxu0 }
 0x973   : > { %v2678_v9 = vmul.f32 -1.442695, %v2235_v7  ;;  %v2236_v12 = vadd.f32 %v2162_v11, %v2092_v10 }
 0x975   : > { %3447 = vpow2.f32 %v2678_v9  ;;  %v2679_v15 = vmul.f32 -1.442695, %v2236_v12 }
 0x977   : > { %3449 = vpow2.f32 %v2679_v15 }
 0x982   : > { %v3448_v17 = vpop.eup %3447 }
 0x983   : > { %v2243_v18 = vadd.f32 1.0, %v3448_v17 }
 0x984   : > { %v3450_v19 = vpop.eup %3449 }
 0x985   : > { %3451 = vrcp.f32 %v2243_v18  ;;  %v2244_v31 = vadd.f32 1.0, %v3450_v19 }
 0x992   : > { %v3452_v37 = vpop.eup %3451 }
 0x993   : > { %v2250_v36 = vmul.f32 %v3452_v37, %v2249_v38 }
 0x995   : > { %v2251_v13 = vadd.f32 %v2250_v36, %v2093_v39 }
 0x997   : > { %3453 = vtanh.f32 %v2251_v13 }
 0x998   : > { %3455 = vrcp.f32 %v2244_v31 }
 0x9a4   : > { %v3454_v33 = vpop.eup %3453 }
 0x9a5   : > { %v2253_v35 = vsub.f32 %v4977_v58, %v3454_v33  ;;  %v3456_v41 = vpop.eup %3455 }
 0x9a7   : > { %v2254_v32 = vmul.f32 %v3456_v41, %v2253_v35 }
 0x9a9   : > { %v2255_v23 = vadd.f32 %v3454_v33, %v2254_v32 }
 0x9ab   : > { %2256 = vst [vmem:[#allocation2 + $0x28] sm:$0xff] %v2255_v23  ;;  %2325 = vmatmul.mubr.f32.vlgmr.msra.gmra.mxu0 %v2255_v23  ;;  %3255 = vmatmul.mubr.f32.vlgmr.msra.gmra.mxu1 %v2255_v23 }
 0xa6b   : > { %v2326_v16 = vpop.f32.mrf.mxu0  ;;  %v2397_v20 = vpop.f32.mrf.mxu1 }
 0xa6c   : > { %v2401_v21 = vadd.f32 %v2326_v16, %v2257_v24  ;;  %v2415_v46 = vadd.f32 %v3515_v25, %v2397_v20 }
 0xa6d   : > { %v3256_v22 = vpop.f32.mrf.mxu1  ;;  %v2328_v27 = vpop.f32.mrf.mxu0 }
 0xa6e   : > { %v2680_v29 = vmul.f32 -1.442695, %v2401_v21  ;;  %v2402_v28 = vadd.f32 %v2328_v27, %v2258_v26 }
 0xa70   : > { %3457 = vpow2.f32 %v2680_v29  ;;  %v2681_v40 = vmul.f32 -1.442695, %v2402_v28 }
 0xa72   : > { %3459 = vpow2.f32 %v2681_v40 }
 0xa7d   : > { %v3458_v43 = vpop.eup %3457 }
 0xa7e   : > { %v2409_v44 = vadd.f32 1.0, %v3458_v43 }
 0xa7f   : > { %v3460_v45 = vpop.eup %3459 }
 0xa80   : > { %3461 = vrcp.f32 %v2409_v44  ;;  %v2410_v51 = vadd.f32 1.0, %v3460_v45 }
 0xa8d   : > { %v3462_v47 = vpop.eup %3461 }
 0xa8e   : > { %v2416_v49 = vmul.f32 %v3462_v47, %v2415_v46 }
 0xa90   : > { %v2417_v50 = vadd.f32 %v2416_v49, %v2259_v48 }
 0xa92   : > { %3463 = vtanh.f32 %v2417_v50 }
 0xa93   : > { %3465 = vrcp.f32 %v2410_v51 }
 0xa9f   : > { %v3464_v52 = vpop.eup %3463 }
 0xaa0   : > { %v2419_v56 = vsub.f32 %v2255_v23, %v3464_v52  ;;  %v3466_v59 = vpop.eup %3465 }
 0xaa2   : > { %v2420_v60 = vmul.f32 %v3466_v59, %v2419_v56  ;;  %2426 = sbr.rel (%p2682_p7) target bundleno = 2956 (0xb8c), region = 80 }
 0xaa4   : > { %v2421_v61 = vadd.f32 %v3464_v52, %v2420_v60 }
 0xaa6   : > { %2422 = vst [vmem:[#allocation2 + $0x38] sm:$0xff] %v2421_v61 }
 0xaa7   : > { %v2443_v62 = vld [vmem:[#allocation12 + $0x78] sm:$0xff]  ;;  %v3741_v63 = vmov 0.0   ;;  %v2442_v1 = vld [vmem:[#allocation12 + $0x70] sm:$0xff]  ;;  %vm3742_vm1 = vmmov 0   ;;  %v2441_v2 = vld [vmem:[#allocation12 + $0x68] sm:$0xff]  ;;  %v2427_v5 = vmax.f32 %v2421_v61, 0.0 }
 0xaa8   : > { %3257 = vmatprep.subr.mxu0 %v3741_v63  ;;  %3289 = vmatprep.mubr.msk.f32.mxu0 %vm3742_vm1, %v3741_v63  ;;  %v2440_v42 = vld [vmem:[#allocation12 + $0x60] sm:$0xff]  ;;  %v2439_v53 = vld [vmem:[#allocation12 + $0x58] sm:$0xff]  ;;  %v2438_v54 = vld [vmem:[#allocation12 + $0x50] sm:$0xff] }
 0xaa9   : > { %3258 = vmatpush3.msra.mxu0 %v2443_v62  ;;  %v2437_v55 = vld [vmem:[#allocation12 + $0x48] sm:$0xff]  ;;  %v2436_v57 = vld [vmem:[#allocation12 + $0x40] sm:$0xff]  ;;  %v2435_v58 = vld [vmem:[#allocation12 + $0x38] sm:$0xff] }
 0xaaa   : > { %3259 = vmatprep.subr.mxu0 %v3741_v63  ;;  %v2434_v34 = vld [vmem:[#allocation12 + $0x30] sm:$0xff]  ;;  %v2433_v30 = vld [vmem:[#allocation12 + $0x28] sm:$0xff]  ;;  %v2432_v14 = vld [vmem:[#allocation12 + $0x20] sm:$0xff] }
 0xaab   : > { %3260 = vmatpush3.msra.mxu0 %v2442_v1  ;;  %v2431_v0 = vld [vmem:[#allocation12 + $0x18] sm:$0xff]  ;;  %v2430_v3 = vld [vmem:[#allocation12 + $0x10] sm:$0xff]  ;;  %v2429_v4 = vld [vmem:[#allocation12 + $0x8] sm:$0xff] }
 0xaac   : > { %3261 = vmatprep.subr.mxu0 %v3741_v63  ;;  %v2428_v6 = vld [vmem:[#allocation12] sm:$0xff]  ;;  %v2683_v7 = vld [vmem:[%s5084_s6] ss:$0 sm:$0xff] }
 0xaad   : > { %3262 = vmatpush3.msra.mxu0 %v2441_v2 }
 0xaae   : > { %3263 = vmatprep.subr.mxu0 %v3741_v63 }
 0xaaf   : > { %3264 = vmatpush3.msra.mxu0 %v2440_v42 }
 0xab0   : > { %3265 = vmatprep.subr.mxu0 %v3741_v63 }
 0xab1   : > { %3266 = vmatpush3.msra.mxu0 %v2439_v53 }
 0xab2   : > { %3267 = vmatprep.subr.mxu0 %v3741_v63 }
 0xab3   : > { %3268 = vmatpush3.msra.mxu0 %v2438_v54 }
 0xab4   : > { %3269 = vmatprep.subr.mxu0 %v3741_v63 }
 0xab5   : > { %3270 = vmatpush3.msra.mxu0 %v2437_v55 }
 0xab6   : > { %3271 = vmatprep.subr.mxu0 %v3741_v63 }
 0xab7   : > { %3272 = vmatpush3.msra.mxu0 %v2436_v57 }
 0xab8   : > { %3273 = vmatprep.subr.mxu0 %v3741_v63 }
 0xab9   : > { %3274 = vmatpush3.msra.mxu0 %v2435_v58 }
 0xaba   : > { %3275 = vmatprep.subr.mxu0 %v3741_v63 }
 0xabb   : > { %3276 = vmatpush3.msra.mxu0 %v2434_v34 }
 0xabc   : > { %3277 = vmatprep.subr.mxu0 %v3741_v63 }
 0xabd   : > { %3278 = vmatpush3.msra.mxu0 %v2433_v30 }
 0xabe   : > { %3279 = vmatprep.subr.mxu0 %v3741_v63 }
 0xabf   : > { %3280 = vmatpush3.msra.mxu0 %v2432_v14 }
 0xac0   : > { %3281 = vmatprep.subr.mxu0 %v3741_v63 }
 0xac1   : > { %3282 = vmatpush3.msra.mxu0 %v2431_v0 }
 0xac2   : > { %3283 = vmatprep.subr.mxu0 %v3741_v63 }
 0xac3   : > { %3284 = vmatpush3.msra.mxu0 %v2430_v3 }
 0xac4   : > { %3285 = vmatprep.subr.mxu0 %v3741_v63 }
 0xac5   : > { %3286 = vmatpush3.msra.mxu0 %v2429_v4 }
 0xac6   : > { %3287 = vmatprep.subr.mxu0 %v3741_v63 }
 0xac7   : > { %3288 = vmatpush3.msra.mxu0 %v2428_v6 }
 0xac8   : > { %3290 = vmatmul.mubr.f32.vlgmr.msra.gmra.mxu0 %v2427_v5 }
 0xb88   : > { %v2517_v8 = vpop.f32.mrf.mxu0 }
 0xb89   : > { %v2518_v9 = vadd.f32 %v2683_v7, %v2517_v8 }
 0xb8a   : > { %v3291_v10 = vpop.f32.mrf.mxu0 }
 0xb8b   : > { %2521 = vst [vmem:[#allocation13] sm:$0xff] %v2518_v9 }
 0xb8c PF: > { %p3340_p11 = scmp.eq.s32.totalorder %s3803_s28, 1  ;;  %s3743_s20 = smov [#allocation13]  }
 0xb8d   : > { %s2529_s13 = sshll.u32 %s3743_s20, 4  ;;  %s2530_s13 = int_to_ptr.vmem [resolvable:$true] %s2529_s13 }
 0xb8e   : > { %s3652_s16 = scalar_lea.vmem %s2530_s13, 128  ;;  %p3659_p10 = scmp.lt.s32.totalorder %s2530_s13, %s2530_s13 }
 0xb8f   : > { %p3653_p4 = scmp.ne.s32.totalorder %s2530_s13, %s3652_s16  ;;  %p3660_p12 = scmp.lt.s32.totalorder %s3652_s16, %s3652_s16 }
 0xb91   : > { %p3654_p1 = pnand %p3653_p4, %p3340_p11  ;;  %p3661_p13 = por %p3660_p12, %p3659_p10 }
 0xb93   : > { %p3655_p5 = pneg %p3654_p1 }
 0xb95   : > { %p3662_p0 = pnand %p3661_p13, %p3655_p5 }
 0xb97   : > { %3665 = shalt.err (!%p3662_p0)
}
 0xb98   : > { %3315 = dma.vmem_to_hbm [thread:$0]  (%p3340_p11), %s2530_s13, 128, %s5085_s7, [#allocation6]  }
 0xb99   : > { %3709 = dma.done.wait (%p3340_p11), [#allocation6], 128  }
 0xb9a   : > { %3711 = vsyncadd (%p3340_p11), [#allocation6], 4294967168 }
 0xb9b PF: > { %s5173_s9 = sld [smem:[#allocation19_spill]]  ;;  %p22_p9 = scmp.ge.s32.totalorder %s3806_s29, 4  }
 0xb9c   : > { %s5174_s24 = smov %s3718_s25  ;;  %s5175_s25 = smov %s3722_s26 }
 0xb9d   : > { %s5177_s27 = smov %s3806_s29  ;;  %24 = sbr.rel (!%p22_p9) target bundleno = 10 (0xa), region = 133 }
 0xba1   : > { %s5176_s26 = smov %s5173_s9 }
 0xba2   :  { %2542 = vsyncpa [#allocation5], 1 }
 0xba3   :  { %2544 = vsyncpa [#allocation5 + $0x1], 1 }
 0xba4   :  { %2545 = vsyncpa [#allocation8], 1 }
 0xba5   :  { %2547 = vsyncpa [#allocation8 + $0x1], 1 }
 0xba6   :  { %2548 = vsyncpa [#allocation11], 1 }
 0xba7   :  { %2550 = vsyncpa [#allocation11 + $0x1], 1 }
 0xba8   :  { %2551 = vsyncpa [#allocation6], 1 }
 0xba9   :  { %2553 = vsyncpa [#allocation6 + $0x1], 1 }

</bundles_post_ra>
